<compile_context>
chip_gen: v5e
topology: v5e:2x2
jax: 0.10.0
libtpu: 0.0.40
codegen_flags: <defaults>
</compile_context>

<pallas_src>
import jax
import jax.numpy as jnp
from jax import lax
from jax.experimental import pallas as pl
from jax.experimental.pallas import tpu as pltpu
import numpy as np


def _leaky_relu(x, slope=0.1):
    return jnp.where(x > 0, x, slope * x)


def basic_block_kernel(x_ref, w1_ref, w2_ref, b1_ref, b2_ref, o_ref, pad_ref):
    # x_ref:   (bt, H, W, Cin)       NHWC batch tile, f32
    # w1_ref:  (Cin, Cmid)           1x1 conv weight, BN1 scale folded in
    # w2_ref:  (3, 3*Cmid, Cout)     3x3 conv weight; dim0 = ky, rows = kx*Cmid + c
    # b1_ref:  (1, Cmid)             BN1 shift (f32)
    # b2_ref:  (1, Cout)             BN2 shift (f32)
    # o_ref:   (bt, H, W, Cout)      f32 output
    # pad_ref: (bt, H+2, W, 3*Cmid)  kx-pre-shifted, H-padded conv1 output (compute dtype)
    bt, H, W, Cin = x_ref.shape
    Cmid = w1_ref.shape[1]
    Cout = o_ref.shape[-1]
    cdt = pad_ref.dtype

    # ---- conv1 (1x1) + folded BN1 shift + LeakyReLU -------------------------
    t = x_ref[...].reshape(bt * H * W, Cin).astype(cdt)
    t1 = jnp.dot(t, w1_ref[...], preferred_element_type=jnp.float32)
    t1v = _leaky_relu(t1 + b1_ref[...]).reshape(bt, H, W, Cmid).astype(cdt)

    # ---- kx-pre-shifted padded intermediate ---------------------------------
    # pad_ref[b, hp, w, kx*Cmid + c] == zero-padded conv1 output at
    # (row hp-1, col w + kx - 1).  Column shifts happen in registers so all
    # scratch stores are full-width (sublane/lane aligned); only the two halo
    # rows are zeroed (interior is fully overwritten each grid step).
    zcol = jnp.zeros((bt, H, 1, Cmid), cdt)
    left = jnp.concatenate([zcol, t1v[:, :, :W - 1, :]], axis=2)   # kx = 0 tap
    right = jnp.concatenate([t1v[:, :, 1:, :], zcol], axis=2)      # kx = 2 tap
    pad_ref[:, 1:H + 1, :, :] = jnp.concatenate([left, t1v, right], axis=-1)
    halo = jnp.zeros((bt, 1, W, 3 * Cmid), cdt)
    pad_ref[:, 0:1, :, :] = halo
    pad_ref[:, H + 1:H + 2, :, :] = halo

    # ---- conv2 (3x3, pad=1): 3 MXU matmuls with K = 3*Cmid ------------------
    acc = None
    for ky in range(3):
        patch = pad_ref[:, ky:ky + H, :, :].reshape(bt * H * W, 3 * Cmid)
        part = jnp.dot(patch, w2_ref[ky], preferred_element_type=jnp.float32)
        acc = part if acc is None else acc + part

    acc = _leaky_relu(acc + b2_ref[...])                           # folded BN2 shift

    # ---- residual add: fresh f32 read of x (short live range), store --------
    o_ref[...] = (acc.reshape(bt, H, W, Cout)
                  + x_ref[...].astype(jnp.float32)).astype(o_ref.dtype)


def basic_block_nhwc(x_nhwc, w1_oihw, w2_oihw, scale1, shift1, scale2, shift2,
                     *, compute_dtype=jnp.float32, batch_tile=1,
                     vmem_limit_bytes=64 * 1024 * 1024):
    """NHWC core. scale/shift are folded inference-mode BatchNorm params:
       scale = gamma / sqrt(running_var + eps), shift = beta - running_mean * scale.
    """
    N, H, W, Cin = x_nhwc.shape
    Cmid = w1_oihw.shape[0]
    Cout = w2_oihw.shape[0]
    assert Cout == Cin, "residual add requires planes[1] == inplanes"
    bt = batch_tile
    assert N % bt == 0, "batch_tile must divide N"

    # Fold BN scales into the conv weights (per output channel).
    w1_k = (jnp.transpose(w1_oihw[:, :, 0, 0], (1, 0))
            * scale1.reshape(1, Cmid)).astype(compute_dtype)
    # OIHW -> (ky, kx, c, o) -> (3, 3*Cmid, Cout); row index = kx*Cmid + c
    # (matches the scratch channel layout [left | mid | right]).
    w2_k = (jnp.transpose(w2_oihw, (2, 3, 1, 0)).reshape(3, 3 * Cmid, Cout)
            * scale2.reshape(1, 1, Cout)).astype(compute_dtype)
    b1 = shift1.reshape(1, Cmid).astype(jnp.float32)
    b2 = shift2.reshape(1, Cout).astype(jnp.float32)

    # x stays f32 so the skip connection is exact; it is cast to compute_dtype
    # inside the kernel only for the conv1 matmul.
    x_f32 = x_nhwc.astype(jnp.float32)

    return pl.pallas_call(
        basic_block_kernel,
        out_shape=jax.ShapeDtypeStruct((N, H, W, Cout), jnp.float32),
        grid_spec=pltpu.PrefetchScalarGridSpec(
            num_scalar_prefetch=0,
            grid=(N // bt,),
            in_specs=[
                pl.BlockSpec((bt, H, W, Cin), lambda n: (n, 0, 0, 0)),
                pl.BlockSpec((Cin, Cmid), lambda n: (0, 0)),
                pl.BlockSpec((3, 3 * Cmid, Cout), lambda n: (0, 0, 0)),
                pl.BlockSpec((1, Cmid), lambda n: (0, 0)),
                pl.BlockSpec((1, Cout), lambda n: (0, 0)),
            ],
            out_specs=pl.BlockSpec((bt, H, W, Cout), lambda n: (n, 0, 0, 0)),
            scratch_shapes=[pltpu.VMEM((bt, H + 2, W, 3 * Cmid), compute_dtype)],
        ),
        compiler_params=pltpu.CompilerParams(
            dimension_semantics=("parallel",),
            vmem_limit_bytes=vmem_limit_bytes),
    )(x_f32, w1_k, w2_k, b1, b2)


def basic_block(x_nchw, w1_oihw, w2_oihw, scale1, shift1, scale2, shift2,
                **kwargs):
    """NCHW wrapper for PyTorch parity.
    # TODO(synk): production should stay NHWC end-to-end; these two transposes
    # are extra HBM passes kept only to match the PyTorch layout.
    """
    x_nhwc = jnp.transpose(x_nchw, (0, 2, 3, 1))
    out = basic_block_nhwc(x_nhwc, w1_oihw, w2_oihw,
                           scale1, shift1, scale2, shift2, **kwargs)
    return jnp.transpose(out, (0, 3, 1, 2))


def _ref_forward_nchw(x_nchw, w1, w2, scale1, shift1, scale2, shift2):
    """Pure-JAX f32 reference (same math, unfolded weights)."""
    x = jnp.transpose(x_nchw, (0, 2, 3, 1))
    y = lax.conv_general_dilated(x, jnp.transpose(w1, (2, 3, 1, 0)), (1, 1), "VALID",
                                 dimension_numbers=("NHWC", "HWIO", "NHWC"))
    y = y * scale1 + shift1
    y = jnp.where(y > 0, y, 0.1 * y)
    y = lax.conv_general_dilated(y, jnp.transpose(w2, (2, 3, 1, 0)), (1, 1), "SAME",
                                 dimension_numbers=("NHWC", "HWIO", "NHWC"))
    y = y * scale2 + shift2
    y = jnp.where(y > 0, y, 0.1 * y)
    y = y + x
    return jnp.transpose(y, (0, 3, 1, 2))


if __name__ == "__main__":
    # Small, module-consistent shapes: BasicBlock(inplanes=4, planes=(2, 4)).
    N, Cin, H, W = 2, 4, 16, 16
    Cmid, Cout = 2, 4
    eps = 1e-5

    key = jax.random.PRNGKey(0)
    kx, kw1, kw2 = jax.random.split(key, 3)

    x = jax.random.normal(kx, (N, Cin, H, W), jnp.float32)

    # PyTorch conv weight layout OIHW, bias=False.
    w1 = jax.random.normal(kw1, (Cmid, Cin, 1, 1), jnp.float32) * 0.2
    w2 = jax.random.normal(kw2, (Cout, Cmid, 3, 3), jnp.float32) * 0.2

    # BatchNorm parameters (inference mode), folded to per-channel scale/shift.
    g1 = 1.0 + 0.1 * jnp.arange(Cmid, dtype=jnp.float32)
    be1 = 0.05 * jnp.arange(Cmid, dtype=jnp.float32)
    rm1 = 0.01 * jnp.arange(Cmid, dtype=jnp.float32)
    rv1 = 1.0 + 0.1 * jnp.arange(Cmid, dtype=jnp.float32)
    g2 = 1.0 + 0.05 * jnp.arange(Cout, dtype=jnp.float32)
    be2 = 0.02 * jnp.arange(Cout, dtype=jnp.float32)
    rm2 = 0.03 * jnp.arange(Cout, dtype=jnp.float32)
    rv2 = 1.0 + 0.2 * jnp.arange(Cout, dtype=jnp.float32)

    scale1 = g1 / jnp.sqrt(rv1 + eps)
    shift1 = be1 - rm1 * scale1
    scale2 = g2 / jnp.sqrt(rv2 + eps)
    shift2 = be2 - rm2 * scale2

    ref = jax.block_until_ready(
        _ref_forward_nchw(x, w1, w2, scale1, shift1, scale2, shift2))

    # f32 path: exact (to tolerance) match vs. the f32 reference.
    out = jax.block_until_ready(
        basic_block(x, w1, w2, scale1, shift1, scale2, shift2))
    assert out.shape == (N, Cout, H, W)
    np.testing.assert_allclose(np.asarray(out), np.asarray(ref),
                               rtol=1e-4, atol=1e-4)

    # bf16 production path (f32 accumulation, f32 residual): loose tolerance.
    out_bf16 = jax.block_until_ready(
        basic_block(x, w1, w2, scale1, shift1, scale2, shift2,
                    compute_dtype=jnp.bfloat16))
    np.testing.assert_allclose(np.asarray(out_bf16), np.asarray(ref),
                               rtol=5e-2, atol=5e-2)

    print("KERNEL_OK")
</pallas_src>

<mosaic_0001>
module attributes {stable_mosaic.version = 11 : i64} {
  func.func @basic_block_kernel(%arg0: i32, %arg1: memref<1x16x16x4xf32, #tpu.memory_space<vmem>>, %arg2: memref<4x2xf32, #tpu.memory_space<vmem>>, %arg3: memref<3x6x4xf32, #tpu.memory_space<vmem>>, %arg4: memref<1x2xf32, #tpu.memory_space<vmem>>, %arg5: memref<1x4xf32, #tpu.memory_space<vmem>>, %arg6: memref<1x16x16x4xf32, #tpu.memory_space<vmem>>, %arg7: memref<1x18x16x6xf32, #tpu.memory_space<vmem>>) attributes {dimension_semantics = [#tpu.dimension_semantics<parallel>], iteration_bounds = array<i64: 2>, scalar_prefetch = 0 : i64, scratch_operands = 1 : i64, tpu.core_type = #tpu.core_type<tc>, window_params = [{transform_indices = @transform_0, window_bounds = array<i64: 1, 16, 16, 4>}, {pipeline_mode = #tpu.pipeline_mode<synchronous>, transform_indices = @transform_1, window_bounds = array<i64: 4, 2>}, {pipeline_mode = #tpu.pipeline_mode<synchronous>, transform_indices = @transform_2, window_bounds = array<i64: 3, 6, 4>}, {pipeline_mode = #tpu.pipeline_mode<synchronous>, transform_indices = @transform_3, window_bounds = array<i64: 1, 2>}, {pipeline_mode = #tpu.pipeline_mode<synchronous>, transform_indices = @transform_4, window_bounds = array<i64: 1, 4>}, {transform_indices = @transform_5, window_bounds = array<i64: 1, 16, 16, 4>}]} {
    %c0 = arith.constant 0 : index
    %c0_0 = arith.constant 0 : index
    %c0_1 = arith.constant 0 : index
    %c0_2 = arith.constant 0 : index
    %0 = vector.load %arg1[%c0, %c0_0, %c0_1, %c0_2] : memref<1x16x16x4xf32, #tpu.memory_space<vmem>>, vector<1x16x16x4xf32>
    %1 = vector.shape_cast %0 : vector<1x16x16x4xf32> to vector<256x4xf32>
    %c0_3 = arith.constant 0 : index
    %c0_4 = arith.constant 0 : index
    %2 = vector.load %arg2[%c0_3, %c0_4] : memref<4x2xf32, #tpu.memory_space<vmem>>, vector<4x2xf32>
    %cst = arith.constant dense<0.000000e+00> : vector<256x2xf32>
    %3 = tpu.matmul %1, %2, %cst {dimension_numbers = #tpu.dot_dimension_numbers<[1], [0], [0], [1], [0, 0, 1, 1], [], []>} : vector<256x4xf32>, vector<4x2xf32>, vector<256x2xf32> -> vector<256x2xf32>
    %c0_5 = arith.constant 0 : index
    %c0_6 = arith.constant 0 : index
    %4 = vector.load %arg4[%c0_5, %c0_6] : memref<1x2xf32, #tpu.memory_space<vmem>>, vector<1x2xf32>
    %5 = vector.broadcast %4 : vector<1x2xf32> to vector<256x2xf32>
    %6 = arith.addf %3, %5 : vector<256x2xf32>
    %cst_7 = arith.constant 0.000000e+00 : f32
    %7 = vector.broadcast %cst_7 : f32 to vector<256x2xf32>
    %8 = arith.cmpf ogt, %6, %7 : vector<256x2xf32>
    %cst_8 = arith.constant 1.000000e-01 : f32
    %9 = vector.broadcast %cst_8 : f32 to vector<256x2xf32>
    %10 = arith.mulf %9, %6 : vector<256x2xf32>
    %11 = arith.select %8, %6, %10 : vector<256x2xi1>, vector<256x2xf32>
    %12 = vector.shape_cast %11 : vector<256x2xf32> to vector<1x16x16x2xf32>
    %cst_9 = arith.constant 0.000000e+00 : f32
    %13 = vector.broadcast %cst_9 : f32 to vector<1x16x1x2xf32>
    %14 = vector.extract_strided_slice %12 {offsets = [0, 0, 0, 0], sizes = [1, 16, 15, 2], strides = [1, 1, 1, 1]} : vector<1x16x16x2xf32> to vector<1x16x15x2xf32>
    %15 = tpu.concatenate %13, %14 in 2 : vector<1x16x1x2xf32>, vector<1x16x15x2xf32> -> vector<1x16x16x2xf32>
    %16 = vector.extract_strided_slice %12 {offsets = [0, 0, 1, 0], sizes = [1, 16, 15, 2], strides = [1, 1, 1, 1]} : vector<1x16x16x2xf32> to vector<1x16x15x2xf32>
    %17 = tpu.concatenate %16, %13 in 2 : vector<1x16x15x2xf32>, vector<1x16x1x2xf32> -> vector<1x16x16x2xf32>
    %18 = tpu.concatenate %15, %12, %17 in 3 : vector<1x16x16x2xf32>, vector<1x16x16x2xf32>, vector<1x16x16x2xf32> -> vector<1x16x16x6xf32>
    %c0_10 = arith.constant 0 : index
    %c1 = arith.constant 1 : index
    %c0_11 = arith.constant 0 : index
    %c0_12 = arith.constant 0 : index
    %19 = vector.load %arg7[%c0_10, %c1, %c0_11, %c0_12] : memref<1x18x16x6xf32, #tpu.memory_space<vmem>>, vector<1x16x16x6xf32>
    tpu.vector_store %arg7[%c0_10, %c1, %c0_11, %c0_12], %18 {strides = array<i32>} : memref<1x18x16x6xf32, #tpu.memory_space<vmem>>, vector<1x16x16x6xf32>,
    %cst_13 = arith.constant 0.000000e+00 : f32
    %20 = vector.broadcast %cst_13 : f32 to vector<1x1x16x6xf32>
    %c0_14 = arith.constant 0 : index
    %c0_15 = arith.constant 0 : index
    %c0_16 = arith.constant 0 : index
    %c0_17 = arith.constant 0 : index
    %21 = vector.load %arg7[%c0_14, %c0_15, %c0_16, %c0_17] : memref<1x18x16x6xf32, #tpu.memory_space<vmem>>, vector<1x1x16x6xf32>
    tpu.vector_store %arg7[%c0_14, %c0_15, %c0_16, %c0_17], %20 {strides = array<i32>} : memref<1x18x16x6xf32, #tpu.memory_space<vmem>>, vector<1x1x16x6xf32>,
    %c0_18 = arith.constant 0 : index
    %c17 = arith.constant 17 : index
    %c0_19 = arith.constant 0 : index
    %c0_20 = arith.constant 0 : index
    %22 = vector.load %arg7[%c0_18, %c17, %c0_19, %c0_20] : memref<1x18x16x6xf32, #tpu.memory_space<vmem>>, vector<1x1x16x6xf32>
    tpu.vector_store %arg7[%c0_18, %c17, %c0_19, %c0_20], %20 {strides = array<i32>} : memref<1x18x16x6xf32, #tpu.memory_space<vmem>>, vector<1x1x16x6xf32>,
    %c0_21 = arith.constant 0 : index
    %c0_22 = arith.constant 0 : index
    %c0_23 = arith.constant 0 : index
    %c0_24 = arith.constant 0 : index
    %23 = vector.load %arg7[%c0_21, %c0_22, %c0_23, %c0_24] : memref<1x18x16x6xf32, #tpu.memory_space<vmem>>, vector<1x16x16x6xf32>
    %24 = vector.shape_cast %23 : vector<1x16x16x6xf32> to vector<256x6xf32>
    %c0_25 = arith.constant 0 : index
    %c0_26 = arith.constant 0 : index
    %c0_27 = arith.constant 0 : index
    %25 = vector.load %arg3[%c0_25, %c0_26, %c0_27] : memref<3x6x4xf32, #tpu.memory_space<vmem>>, vector<1x6x4xf32>
    %26 = vector.shape_cast %25 : vector<1x6x4xf32> to vector<6x4xf32>
    %cst_28 = arith.constant dense<0.000000e+00> : vector<256x4xf32>
    %27 = tpu.matmul %24, %26, %cst_28 {dimension_numbers = #tpu.dot_dimension_numbers<[1], [0], [0], [1], [0, 0, 1, 1], [], []>} : vector<256x6xf32>, vector<6x4xf32>, vector<256x4xf32> -> vector<256x4xf32>
    %c0_29 = arith.constant 0 : index
    %c1_30 = arith.constant 1 : index
    %c0_31 = arith.constant 0 : index
    %c0_32 = arith.constant 0 : index
    %28 = vector.load %arg7[%c0_29, %c1_30, %c0_31, %c0_32] : memref<1x18x16x6xf32, #tpu.memory_space<vmem>>, vector<1x16x16x6xf32>
    %29 = vector.shape_cast %28 : vector<1x16x16x6xf32> to vector<256x6xf32>
    %c1_33 = arith.constant 1 : index
    %c0_34 = arith.constant 0 : index
    %c0_35 = arith.constant 0 : index
    %30 = vector.load %arg3[%c1_33, %c0_34, %c0_35] : memref<3x6x4xf32, #tpu.memory_space<vmem>>, vector<1x6x4xf32>
    %31 = vector.shape_cast %30 : vector<1x6x4xf32> to vector<6x4xf32>
    %cst_36 = arith.constant dense<0.000000e+00> : vector<256x4xf32>
    %32 = tpu.matmul %29, %31, %cst_36 {dimension_numbers = #tpu.dot_dimension_numbers<[1], [0], [0], [1], [0, 0, 1, 1], [], []>} : vector<256x6xf32>, vector<6x4xf32>, vector<256x4xf32> -> vector<256x4xf32>
    %33 = arith.addf %27, %32 : vector<256x4xf32>
    %c0_37 = arith.constant 0 : index
    %c2 = arith.constant 2 : index
    %c0_38 = arith.constant 0 : index
    %c0_39 = arith.constant 0 : index
    %34 = vector.load %arg7[%c0_37, %c2, %c0_38, %c0_39] : memref<1x18x16x6xf32, #tpu.memory_space<vmem>>, vector<1x16x16x6xf32>
    %35 = vector.shape_cast %34 : vector<1x16x16x6xf32> to vector<256x6xf32>
    %c2_40 = arith.constant 2 : index
    %c0_41 = arith.constant 0 : index
    %c0_42 = arith.constant 0 : index
    %36 = vector.load %arg3[%c2_40, %c0_41, %c0_42] : memref<3x6x4xf32, #tpu.memory_space<vmem>>, vector<1x6x4xf32>
    %37 = vector.shape_cast %36 : vector<1x6x4xf32> to vector<6x4xf32>
    %cst_43 = arith.constant dense<0.000000e+00> : vector<256x4xf32>
    %38 = tpu.matmul %35, %37, %cst_43 {dimension_numbers = #tpu.dot_dimension_numbers<[1], [0], [0], [1], [0, 0, 1, 1], [], []>} : vector<256x6xf32>, vector<6x4xf32>, vector<256x4xf32> -> vector<256x4xf32>
    %39 = arith.addf %33, %38 : vector<256x4xf32>
    %c0_44 = arith.constant 0 : index
    %c0_45 = arith.constant 0 : index
    %40 = vector.load %arg5[%c0_44, %c0_45] : memref<1x4xf32, #tpu.memory_space<vmem>>, vector<1x4xf32>
    %41 = vector.broadcast %40 : vector<1x4xf32> to vector<256x4xf32>
    %42 = arith.addf %39, %41 : vector<256x4xf32>
    %cst_46 = arith.constant 0.000000e+00 : f32
    %43 = vector.broadcast %cst_46 : f32 to vector<256x4xf32>
    %44 = arith.cmpf ogt, %42, %43 : vector<256x4xf32>
    %cst_47 = arith.constant 1.000000e-01 : f32
    %45 = vector.broadcast %cst_47 : f32 to vector<256x4xf32>
    %46 = arith.mulf %45, %42 : vector<256x4xf32>
    %47 = arith.select %44, %42, %46 : vector<256x4xi1>, vector<256x4xf32>
    %48 = vector.shape_cast %47 : vector<256x4xf32> to vector<1x16x16x4xf32>
    %c0_48 = arith.constant 0 : index
    %c0_49 = arith.constant 0 : index
    %c0_50 = arith.constant 0 : index
    %c0_51 = arith.constant 0 : index
    %49 = vector.load %arg1[%c0_48, %c0_49, %c0_50, %c0_51] : memref<1x16x16x4xf32, #tpu.memory_space<vmem>>, vector<1x16x16x4xf32>
    %50 = arith.addf %48, %49 : vector<1x16x16x4xf32>
    %c0_52 = arith.constant 0 : index
    %c0_53 = arith.constant 0 : index
    %c0_54 = arith.constant 0 : index
    %c0_55 = arith.constant 0 : index
    %51 = vector.load %arg6[%c0_52, %c0_53, %c0_54, %c0_55] : memref<1x16x16x4xf32, #tpu.memory_space<vmem>>, vector<1x16x16x4xf32>
    tpu.vector_store %arg6[%c0_52, %c0_53, %c0_54, %c0_55], %50 {strides = array<i32>} : memref<1x16x16x4xf32, #tpu.memory_space<vmem>>, vector<1x16x16x4xf32>,
    return
  }
  func.func @transform_0(%arg0: i32) -> (i32, i32, i32, i32) {
    %c0_i32 = arith.constant 0 : i32
    %c0_i32_0 = arith.constant 0 : i32
    %c0_i32_1 = arith.constant 0 : i32
    %c0_i32_2 = arith.constant 0 : i32
    return %arg0, %c0_i32, %c0_i32_0, %c0_i32_1 : i32, i32, i32, i32
  }
  func.func @transform_1(%arg0: i32) -> (i32, i32) {
    %c0_i32 = arith.constant 0 : i32
    %c0_i32_0 = arith.constant 0 : i32
    %c0_i32_1 = arith.constant 0 : i32
    return %c0_i32, %c0_i32_0 : i32, i32
  }
  func.func @transform_2(%arg0: i32) -> (i32, i32, i32) {
    %c0_i32 = arith.constant 0 : i32
    %c0_i32_0 = arith.constant 0 : i32
    %c0_i32_1 = arith.constant 0 : i32
    %c0_i32_2 = arith.constant 0 : i32
    return %c0_i32, %c0_i32_0, %c0_i32_1 : i32, i32, i32
  }
  func.func @transform_3(%arg0: i32) -> (i32, i32) {
    %c0_i32 = arith.constant 0 : i32
    %c0_i32_0 = arith.constant 0 : i32
    %c0_i32_1 = arith.constant 0 : i32
    return %c0_i32, %c0_i32_0 : i32, i32
  }
  func.func @transform_4(%arg0: i32) -> (i32, i32) {
    %c0_i32 = arith.constant 0 : i32
    %c0_i32_0 = arith.constant 0 : i32
    %c0_i32_1 = arith.constant 0 : i32
    return %c0_i32, %c0_i32_0 : i32, i32
  }
  func.func @transform_5(%arg0: i32) -> (i32, i32, i32, i32) {
    %c0_i32 = arith.constant 0 : i32
    %c0_i32_0 = arith.constant 0 : i32
    %c0_i32_1 = arith.constant 0 : i32
    %c0_i32_2 = arith.constant 0 : i32
    return %arg0, %c0_i32, %c0_i32_0, %c0_i32_1 : i32, i32, i32, i32
  }
}

</mosaic_0001>

<bundles_post_ra>
// kernel: tpu_custom_call.1
= control target key start
LH: loop header
LB: loop body
LE: loop exit
PB: predicated region body
PF: predicated region fallthrough
CT: control target
= control target key end

     0   :  { %s2350_s18 = smov 0   ;;  %s3145_s0 = inlined_call_operand.vmem [shape: f32[2,16,16,4], index: 0, kind: input, shape index: {}]   ;;  %s3146_s1 = inlined_call_operand.vmem [shape: f32[4,2], index: 1, kind: input, shape index: {}]   ;;  %s3147_s2 = inlined_call_operand.vmem [shape: f32[3,6,4], index: 2, kind: input, shape index: {}]   ;;  %s3148_s3 = inlined_call_operand.vmem [shape: f32[1,2], index: 3, kind: input, shape index: {}]   ;;  %s3149_s4 = inlined_call_operand.vmem [shape: f32[1,4], index: 4, kind: input, shape index: {}]   ;;  %s3150_s5 = inlined_call_operand.vmem [shape: f32[2,16,16,4], index: 5, kind: output, shape index: {}]  }
   0x1 LB: > { %s2148_s19 = sadd.s32 4294967295, %s2315_s18   ;;  %p2152_p0 = scmp.ge.s32.totalorder %s2315_s18, 1  ;;  %s2315_s18 = sphi %s2350_s18, %s15_s18  }
   0x2   : > { %p187_p1 = scmp.lt.s32.totalorder %s2315_s18, 3 }
   0x4   : > { %p188_p2 = pnand %p2152_p0, %p187_p1 }
   0x5   : > { %p215_p3 = scmp.lt.s32.totalorder (!%p188_p2), %s2148_s19, 1  ;;  %s2317_s28 = smov (!%p188_p2), 2  }
   0x6   : > { %191 = sbr.rel (%p188_p2) target bundleno = 688 (0x2b0), region = 40  ;;  %s2318_s29 = smov (!%p188_p2), 4  }
   0xb   : > { %v257_v0 = vld [vmem:[%s3146_s1] sm:$0xf]  ;;  %vm359_vm0 = vcmask 1043456   ;;  %s3152_s19 = smov (!%p215_p3, %s2148_s19), 1  ;;  %vm262_vm1 = vcmask 31744   ;;  %vm701_vm4 = vcmask 1046528  }
   0xc   : > { %2157 = vmatpush.msk.msra.mxu0 %vm359_vm0, %v257_v0  ;;  %s2293_s22 = sshll.u32 %s3152_s19, 8  ;;  %v2406_v17 = vld [vmem:[%s3148_s3] ss:$0 sm:$0xff]  ;;  %vm604_vm5 = vcmask 1040384   ;;  %vm1056_vm15 = vcmask 48128  }
   0xd   : > { %s2369_s25 = scalar_lea.vmem %s3145_s0, %s2293_s22  ;;  %s2922_s17 = scalar_lea.vmem %s3150_s5, %s2293_s22 }
   0xe   : > { %v225_v1 = vld [vmem:[%s2369_s25] sm:$0xff]  ;;  %v226_v2 = vld [vmem:[%s2369_s25 + $0x8] sm:$0xff]  ;;  %v227_v3 = vld [vmem:[%s2369_s25 + $0x10] sm:$0xff] }
   0xf   : > { %2158 = vmatmul.msk.f32.vlgmr.msra.gmra.mxu0 %vm262_vm1, %v225_v1  ;;  %v228_v4 = vld [vmem:[%s2369_s25 + $0x18] sm:$0xff]  ;;  %v229_v5 = vld [vmem:[%s2369_s25 + $0x20] sm:$0xff]  ;;  %v230_v6 = vld [vmem:[%s2369_s25 + $0x28] sm:$0xff] }
  0x10   : > { %v231_v7 = vld [vmem:[%s2369_s25 + $0x30] sm:$0xff]  ;;  %v232_v8 = vld [vmem:[%s2369_s25 + $0x38] sm:$0xff]  ;;  %v233_v9 = vld [vmem:[%s2369_s25 + $0x40] sm:$0xff] }
  0x11   : > { %v234_v10 = vld [vmem:[%s2369_s25 + $0x48] sm:$0xff]  ;;  %v235_v11 = vld [vmem:[%s2369_s25 + $0x50] sm:$0xff]  ;;  %v236_v12 = vld [vmem:[%s2369_s25 + $0x58] sm:$0xff] }
  0x12   : > { %v237_v13 = vld [vmem:[%s2369_s25 + $0x60] sm:$0xff]  ;;  %v238_v14 = vld [vmem:[%s2369_s25 + $0x68] sm:$0xff]  ;;  %v239_v15 = vld [vmem:[%s2369_s25 + $0x70] sm:$0xff] }
  0x13   : > { %v240_v16 = vld [vmem:[%s2369_s25 + $0x78] sm:$0xff]  ;;  %v241_v19 = vld [vmem:[%s2369_s25 + $0x80] sm:$0xff]  ;;  %v242_v24 = vld [vmem:[%s2369_s25 + $0x88] sm:$0xff] }
  0x14   : > { %v243_v34 = vld [vmem:[%s2369_s25 + $0x90] sm:$0xff]  ;;  %v244_v41 = vld [vmem:[%s2369_s25 + $0x98] sm:$0xff]  ;;  %v245_v51 = vld [vmem:[%s2369_s25 + $0xa0] sm:$0xff] }
  0x15   : > { %v246_v57 = vld [vmem:[%s2369_s25 + $0xa8] sm:$0xff] }
  0x17   : > { %2159 = vmatmul.msk.f32.gmra.mxu0 %vm262_vm1, %v226_v2 }
  0x1f   : > { %2160 = vmatmul.msk.f32.gmra.mxu0 %vm262_vm1, %v227_v3 }
  0x27   : > { %2161 = vmatmul.msk.f32.gmra.mxu0 %vm262_vm1, %v228_v4  ;;  %v247_v4 = vld [vmem:[%s2369_s25 + $0xb0] sm:$0xff] }
  0x2f   : > { %2162 = vmatmul.msk.f32.gmra.mxu0 %vm262_vm1, %v229_v5 }
  0x37   : > { %2163 = vmatmul.msk.f32.gmra.mxu0 %vm262_vm1, %v230_v6 }
  0x3f   : > { %2164 = vmatmul.msk.f32.gmra.mxu0 %vm262_vm1, %v231_v7 }
  0x47   : > { %2165 = vmatmul.msk.f32.gmra.mxu0 %vm262_vm1, %v232_v8 }
  0x4f   : > { %2166 = vmatmul.msk.f32.gmra.mxu0 %vm262_vm1, %v233_v9 }
  0x57   : > { %2167 = vmatmul.msk.f32.gmra.mxu0 %vm262_vm1, %v234_v10 }
  0x5f   : > { %2168 = vmatmul.msk.f32.gmra.mxu0 %vm262_vm1, %v235_v11  ;;  %v248_v11 = vld [vmem:[%s2369_s25 + $0xb8] sm:$0xff] }
  0x67   : > { %2169 = vmatmul.msk.f32.gmra.mxu0 %vm262_vm1, %v236_v12 }
  0x6f   : > { %2170 = vmatmul.msk.f32.gmra.mxu0 %vm262_vm1, %v237_v13 }
  0x77   : > { %2171 = vmatmul.msk.f32.gmra.mxu0 %vm262_vm1, %v238_v14 }
  0x7f   : > { %2172 = vmatmul.msk.f32.gmra.mxu0 %vm262_vm1, %v239_v15 }
  0x87   : > { %2173 = vmatmul.msk.f32.gmra.mxu0 %vm262_vm1, %v240_v16 }
  0x8c   : > { %v380_v18 = vpop.f32.mrf.mxu0 }
  0x8d   : > { %v381_v20 = vadd.f32 %v2406_v17, %v380_v18 }
  0x8f   : > { %2174 = vmatmul.msk.f32.gmra.mxu0 %vm262_vm1, %v241_v19  ;;  %vm476_vm2 = vcmp.gt.f32.partialorder %v381_v20, 0.0  ;;  %v508_v21 = vmul.f32 0.1, %v381_v20 }
  0x91   : > { %v2411_v22 = vsel %vm476_vm2, %v381_v20, %v508_v21  ;;  %vm1257_vm2 = vcmask 1045504  }
  0x92   : > { %782 = vrot.lane.b32.xlu1 %v2411_v22, %s2317_s28  ;;  %v605_v28 = vrot.slane %v2411_v22, 7  ;;  %v702_v29 = vrot.slane %v2411_v22, 1 }
  0x94   : > { %v383_v23 = vpop.f32.mrf.mxu0 }
  0x95   : > { %v384_v25 = vadd.f32 %v2406_v17, %v383_v23 }
  0x97   : > { %vm477_vm3 = vcmp.gt.f32.partialorder %v384_v25, 0.0  ;;  %v509_v26 = vmul.f32 0.1, %v384_v25  ;;  %2175 = vmatmul.msk.f32.gmra.mxu0 %vm262_vm1, %v242_v24  ;;  %v249_v24 = vld [vmem:[%s2369_s25 + $0xc0] sm:$0xff] }
  0x99   : > { %v541_v27 = vsel %vm477_vm3, %v384_v25, %v509_v26 }
  0x9a   : > { %v703_v30 = vrot.slane %v541_v27, 1  ;;  %v606_v31 = vrot.slane %v541_v27, 7 }
  0x9c   : > { %v386_v32 = vpop.f32.mrf.mxu0  ;;  %v704_v33 = vsel %vm701_vm4, %v702_v29, %v703_v30  ;;  %v2425_v35 = vsel %vm604_vm5, %v605_v28, %v606_v31  ;;  %v766_v40 = vsel %vm701_vm4, %v703_v30, 0.0  ;;  %v250_v31 = vld [vmem:[%s2369_s25 + $0xc8] sm:$0xff] }
  0x9d   : > { %v387_v36 = vadd.f32 %v2406_v17, %v386_v32  ;;  %894 = vrot.lane.b32.xlu1 %v704_v33, %s2318_s29 }
  0x9f   : > { %2176 = vmatmul.msk.f32.gmra.mxu0 %vm262_vm1, %v243_v34  ;;  %vm478_vm6 = vcmp.gt.f32.partialorder %v387_v36, 0.0  ;;  %v510_v37 = vmul.f32 0.1, %v387_v36 }
  0xa1   : > { %v2430_v38 = vsel %vm478_vm6, %v387_v36, %v510_v37 }
  0xa2   : > { %786 = vrot.lane.b32.xlu0 %v2430_v38, %s2317_s28  ;;  %v608_v45 = vrot.slane %v2430_v38, 7  ;;  %v705_v46 = vrot.slane %v2430_v38, 1 }
  0xa4   : > { %v389_v39 = vpop.f32.mrf.mxu0 }
  0xa5   : > { %v390_v42 = vadd.f32 %v2406_v17, %v389_v39  ;;  %896 = vrot.lane.b32.xlu1 %v766_v40, %s2318_s29 }
  0xa7   : > { %2177 = vmatmul.msk.f32.gmra.mxu0 %vm262_vm1, %v244_v41  ;;  %vm479_vm7 = vcmp.gt.f32.partialorder %v390_v42, 0.0  ;;  %v511_v43 = vmul.f32 0.1, %v390_v42 }
  0xa9   : > { %v543_v44 = vsel %vm479_vm7, %v390_v42, %v511_v43 }
  0xaa   : > { %788 = vrot.lane.b32.xlu2 %v543_v44, %s2317_s28  ;;  %v609_v47 = vrot.slane %v543_v44, 7  ;;  %v706_v48 = vrot.slane %v543_v44, 1  ;;  %v251_v44 = vld [vmem:[%s2369_s25 + $0xd0] sm:$0xff] }
  0xac   : > { %v392_v49 = vpop.f32.mrf.mxu0  ;;  %v707_v50 = vsel %vm701_vm4, %v705_v46, %v706_v48  ;;  %v2447_v52 = vsel %vm604_vm5, %v608_v45, %v609_v47  ;;  %v767_v54 = vsel %vm701_vm4, %v706_v48, 0.0 }
  0xad   : > { %898 = vrot.lane.b32.xlu0 %v707_v50, %s2318_s29  ;;  %v393_v53 = vadd.f32 %v2406_v17, %v392_v49  ;;  %v2319_v49 = vmov 0.0  }
  0xae   : > { %1089 = vst.msk [vmem:[#allocation2] sm:$0xff] %vm1056_vm15, %v2319_v49 }
  0xaf   : > { %2178 = vmatmul.msk.f32.gmra.mxu0 %vm262_vm1, %v245_v51  ;;  %v512_v55 = vmul.f32 0.1, %v393_v53  ;;  %vm480_vm8 = vcmp.gt.f32.partialorder %v393_v53, 0.0  ;;  %1090 = vst.msk [vmem:[#allocation2 + $0x8] sm:$0xff] %vm1056_vm15, %v2319_v49 }
  0xb0   : > { %1092 = vst.msk [vmem:[#allocation2 + $0x110] sm:$0xff] %vm1056_vm15, %v2319_v49 }
  0xb1   : > { %v2458_v59 = vsel %vm480_vm8, %v393_v53, %v512_v55  ;;  %v252_v53 = vld [vmem:[%s2369_s25 + $0xd8] sm:$0xff]  ;;  %1093 = vst.msk [vmem:[#allocation2 + $0x118] sm:$0xff] %vm1056_vm15, %v2319_v49 }
  0xb2   : > { %900 = vrot.lane.b32.xlu2 %v767_v54, %s2318_s29  ;;  %v611_v62 = vrot.slane %v2458_v59, 7  ;;  %v708_v63 = vrot.slane %v2458_v59, 1 }
  0xb4   : > { %v395_v56 = vpop.f32.mrf.mxu0 }
  0xb5   : > { %v396_v58 = vadd.f32 %v2406_v17, %v395_v56  ;;  %784 = vrot.lane.b32.xlu0 %v541_v27, %s2317_s28  ;;  %v1126_v56 = vld [vmem:[%s3147_s2] sm:$0x3f] }
  0xb6   : > { %2224 = vmatpush.msk.msra.mxu2 %vm1257_vm2, %v1126_v56 }
  0xb7   : > { %2179 = vmatmul.msk.f32.gmra.mxu0 %vm262_vm1, %v246_v57  ;;  %vm481_vm9 = vcmp.gt.f32.partialorder %v396_v58, 0.0  ;;  %v513_v60 = vmul.f32 0.1, %v396_v58 }
  0xb9   : > { %v545_v61 = vsel %vm481_vm9, %v396_v58, %v513_v60  ;;  %v1094_v58 = vld [vmem:[#allocation2] sm:$0xff]  ;;  %vm990_vm9 = vcmask 15360  }
  0xba   : > { %790 = vrot.lane.b32.xlu2 %v2458_v59, %s2317_s28  ;;  %v612_v0 = vrot.slane %v545_v61, 7  ;;  %v709_v1 = vrot.slane %v545_v61, 1  ;;  %792 = vrot.lane.b32.xlu1 %v545_v61, %s2317_s28 }
  0xbb   : > { %2225 = vmatmul.msk.f32.vlgmr.msra.gmra.mxu2 %vm1056_vm15, %v1094_v58 }
  0xbc   : > { %v398_v2 = vpop.f32.mrf.mxu0  ;;  %v710_v3 = vsel %vm701_vm4, %v708_v63, %v709_v1  ;;  %v2470_v5 = vsel %vm604_vm5, %v611_v62, %v612_v0  ;;  %v768_v8 = vsel %vm701_vm4, %v709_v1, 0.0 }
  0xbd   : > { %v399_v6 = vadd.f32 %v2406_v17, %v398_v2  ;;  %902 = vrot.lane.b32.xlu0 %v710_v3, %s2318_s29 }
  0xbf   : > { %2180 = vmatmul.msk.f32.gmra.mxu0 %vm262_vm1, %v247_v4  ;;  %v514_v7 = vmul.f32 0.1, %v399_v6  ;;  %vm482_vm10 = vcmp.gt.f32.partialorder %v399_v6, 0.0  ;;  %v253_v4 = vld [vmem:[%s2369_s25 + $0xe0] sm:$0xff] }
  0xc1   : > { %v2477_v10 = vsel %vm482_vm10, %v399_v6, %v514_v7 }
  0xc2   : > { %904 = vrot.lane.b32.xlu2 %v768_v8, %s2318_s29  ;;  %v614_v15 = vrot.slane %v2477_v10, 7  ;;  %v711_v16 = vrot.slane %v2477_v10, 1 }
  0xc4   : > { %v401_v9 = vpop.f32.mrf.mxu0 }
  0xc5   : > { %v402_v12 = vadd.f32 %v2406_v17, %v401_v9  ;;  %794 = vrot.lane.b32.xlu0 %v2477_v10, %s2317_s28  ;;  %v1095_v9 = vld [vmem:[#allocation2 + $0x8] sm:$0xff] }
  0xc6   : > { %2226 = vmatmul.msk.f32.gmra.mxu2 %vm1056_vm15, %v1095_v9 }
  0xc7   : > { %2181 = vmatmul.msk.f32.gmra.mxu0 %vm262_vm1, %v248_v11  ;;  %vm483_vm11 = vcmp.gt.f32.partialorder %v402_v12, 0.0  ;;  %v515_v13 = vmul.f32 0.1, %v402_v12 }
  0xc9   : > { %v547_v14 = vsel %vm483_vm11, %v402_v12, %v515_v13  ;;  %v254_v13 = vld [vmem:[%s2369_s25 + $0xe8] sm:$0xff] }
  0xca   : > { %v615_v18 = vrot.slane %v547_v14, 7  ;;  %796 = vrot.lane.b32.xlu2 %v547_v14, %s2317_s28  ;;  %v712_v19 = vrot.slane %v547_v14, 1 }
  0xcc   : > { %v404_v20 = vpop.f32.mrf.mxu0  ;;  %v769_v21 = vsel %vm701_vm4, %v712_v19, 0.0  ;;  %v713_v23 = vsel %vm701_vm4, %v711_v16, %v712_v19  ;;  %v2493_v25 = vsel %vm604_vm5, %v614_v15, %v615_v18  ;;  %v2190_v18 = vld [vmem:[%s3147_s2 + $0x8] sm:$0x3f] }
  0xcd   : > { %v405_v26 = vadd.f32 %v2406_v17, %v404_v20  ;;  %908 = vrot.lane.b32.xlu0 %v769_v21, %s2318_s29  ;;  %906 = vrot.lane.b32.xlu1 %v713_v23, %s2318_s29 }
  0xce   : > { %2191 = vmatpush.msk.msra.mxu1 %vm1257_vm2, %v2190_v18 }
  0xcf   : > { %2182 = vmatmul.msk.f32.gmra.mxu0 %vm262_vm1, %v249_v24  ;;  %v516_v27 = vmul.f32 0.1, %v405_v26  ;;  %vm484_vm12 = vcmp.gt.f32.partialorder %v405_v26, 0.0 }
  0xd1   : > { %v2499_v30 = vsel %vm484_vm12, %v405_v26, %v516_v27 }
  0xd2   : > { %v617_v36 = vrot.slane %v2499_v30, 7  ;;  %v714_v37 = vrot.slane %v2499_v30, 1 }
  0xd4   : > { %v407_v29 = vpop.f32.mrf.mxu0 }
  0xd5   : > { %v408_v32 = vadd.f32 %v2406_v17, %v407_v29  ;;  %798 = vrot.lane.b32.xlu1 %v2499_v30, %s2317_s28 }
  0xd7   : > { %v517_v33 = vmul.f32 0.1, %v408_v32  ;;  %2183 = vmatmul.msk.f32.gmra.mxu0 %vm262_vm1, %v250_v31  ;;  %vm485_vm13 = vcmp.gt.f32.partialorder %v408_v32, 0.0  ;;  %v255_v31 = vld [vmem:[%s2369_s25 + $0xf0] sm:$0xff] }
  0xd9   : > { %v549_v34 = vsel %vm485_vm13, %v408_v32, %v517_v33 }
  0xda   : > { %v618_v39 = vrot.slane %v549_v34, 7  ;;  %v715_v40 = vrot.slane %v549_v34, 1  ;;  %800 = vrot.lane.b32.xlu0 %v549_v34, %s2317_s28 }
  0xdc   : > { %v410_v41 = vpop.f32.mrf.mxu0  ;;  %v716_v42 = vsel %vm701_vm4, %v714_v37, %v715_v40  ;;  %v770_v43 = vsel %vm701_vm4, %v715_v40, 0.0  ;;  %v2515_v46 = vsel %vm604_vm5, %v617_v36, %v618_v39 }
  0xdd   : > { %v411_v47 = vadd.f32 %v2406_v17, %v410_v41  ;;  %910 = vrot.lane.b32.xlu2 %v716_v42, %s2318_s29  ;;  %912 = vrot.lane.b32.xlu1 %v770_v43, %s2318_s29  ;;  %v256_v41 = vld [vmem:[%s2369_s25 + $0xf8] sm:$0xff] }
  0xdf   : > { %2184 = vmatmul.msk.f32.gmra.mxu0 %vm262_vm1, %v251_v44  ;;  %v518_v48 = vmul.f32 0.1, %v411_v47  ;;  %vm486_vm14 = vcmp.gt.f32.partialorder %v411_v47, 0.0 }
  0xe1   : > { %v2523_v51 = vsel %vm486_vm14, %v411_v47, %v518_v48  ;;  %v2257_v47 = vld [vmem:[%s3147_s2 + $0x10] sm:$0x3f] }
  0xe2   : > { %v620_v60 = vrot.slane %v2523_v51, 7  ;;  %v717_v61 = vrot.slane %v2523_v51, 1  ;;  %2258 = vmatpush.msk.msra.mxu3 %vm1257_vm2, %v2257_v47 }
  0xe4   : > { %v413_v50 = vpop.f32.mrf.mxu0 }
  0xe5   : > { %v414_v54 = vadd.f32 %v2406_v17, %v413_v50  ;;  %802 = vrot.lane.b32.xlu2 %v2523_v51, %s2317_s28 }
  0xe7   : > { %v519_v55 = vmul.f32 0.1, %v414_v54  ;;  %2185 = vmatmul.msk.f32.gmra.mxu0 %vm262_vm1, %v252_v53  ;;  %vm487_vm0 = vcmp.gt.f32.partialorder %v414_v54, 0.0 }
  0xe9   : > { %v551_v57 = vsel %vm487_vm0, %v414_v54, %v519_v55 }
  0xea   : > { %v621_v63 = vrot.slane %v551_v57, 7  ;;  %804 = vrot.lane.b32.xlu1 %v551_v57, %s2317_s28  ;;  %v718_v0 = vrot.slane %v551_v57, 1 }
  0xec   : > { %v416_v1 = vpop.f32.mrf.mxu0  ;;  %v771_v2 = vsel %vm701_vm4, %v718_v0, 0.0  ;;  %v719_v3 = vsel %vm701_vm4, %v717_v61, %v718_v0  ;;  %v2546_v6 = vsel %vm604_vm5, %v620_v60, %v621_v63 }
  0xed   : > { %v417_v7 = vadd.f32 %v2406_v17, %v416_v1  ;;  %916 = vrot.lane.b32.xlu2 %v771_v2, %s2318_s29  ;;  %914 = vrot.lane.b32.xlu0 %v719_v3, %s2318_s29 }
  0xef   : > { %2186 = vmatmul.msk.f32.gmra.mxu0 %vm262_vm1, %v253_v4  ;;  %v520_v8 = vmul.f32 0.1, %v417_v7  ;;  %vm488_vm3 = vcmp.gt.f32.partialorder %v417_v7, 0.0 }
  0xf1   : > { %v2553_v12 = vsel %vm488_vm3, %v417_v7, %v520_v8 }
  0xf2   : > { %v623_v20 = vrot.slane %v2553_v12, 7  ;;  %v720_v21 = vrot.slane %v2553_v12, 1 }
  0xf4   : > { %v419_v11 = vpop.f32.mrf.mxu0 }
  0xf5   : > { %v420_v14 = vadd.f32 %v2406_v17, %v419_v11  ;;  %806 = vrot.lane.b32.xlu0 %v2553_v12, %s2317_s28 }
  0xf7   : > { %v521_v16 = vmul.f32 0.1, %v420_v14  ;;  %2187 = vmatmul.msk.f32.gmra.mxu0 %vm262_vm1, %v254_v13  ;;  %vm489_vm6 = vcmp.gt.f32.partialorder %v420_v14, 0.0 }
  0xf9   : > { %v553_v19 = vsel %vm489_vm6, %v420_v14, %v521_v16 }
  0xfa   : > { %v624_v23 = vrot.slane %v553_v19, 7  ;;  %808 = vrot.lane.b32.xlu2 %v553_v19, %s2317_s28  ;;  %v721_v24 = vrot.slane %v553_v19, 1 }
  0xfc   : > { %v422_v26 = vpop.f32.mrf.mxu0  ;;  %v772_v27 = vsel %vm701_vm4, %v721_v24, 0.0  ;;  %v722_v29 = vsel %vm701_vm4, %v720_v21, %v721_v24  ;;  %v2573_v32 = vsel %vm604_vm5, %v623_v20, %v624_v23 }
  0xfd   : > { %v423_v33 = vadd.f32 %v2406_v17, %v422_v26  ;;  %920 = vrot.lane.b32.xlu0 %v772_v27, %s2318_s29  ;;  %918 = vrot.lane.b32.xlu1 %v722_v29, %s2318_s29 }
  0xff   : > { %2188 = vmatmul.msk.f32.gmra.mxu0 %vm262_vm1, %v255_v31  ;;  %v522_v34 = vmul.f32 0.1, %v423_v33  ;;  %vm490_vm7 = vcmp.gt.f32.partialorder %v423_v33, 0.0  ;;  %v686_v31 = vsel %vm604_vm5, 0.0, %v608_v45 }
 0x101   : > { %v2579_v40 = vsel %vm490_vm7, %v423_v33, %v522_v34 }
 0x102   : > { %v626_v49 = vrot.slane %v2579_v40, 7  ;;  %v723_v50 = vrot.slane %v2579_v40, 1 }
 0x104   : > { %v425_v37 = vpop.f32.mrf.mxu0  ;;  %v789_v39 = vpop.permute.xlu2 %788 }
 0x105   : > { %v426_v42 = vadd.f32 %v2406_v17, %v425_v37  ;;  %810 = vrot.lane.b32.xlu1 %v2579_v40, %s2317_s28  ;;  %v783_v44 = vpop.permute.xlu1 %782  ;;  %v994_v55 = vsel %vm990_vm9, %v2447_v52, %v789_v39  ;;  %v685_v52 = vsel %vm604_vm5, 0.0, %v605_v28 }
 0x106   : > { %v991_v2 = vsel %vm990_vm9, %v685_v52, %v783_v44 }
 0x107   : > { %v523_v43 = vmul.f32 0.1, %v426_v42  ;;  %2189 = vmatmul.msk.f32.gmra.mxu0 %vm262_vm1, %v256_v41  ;;  %vm491_vm8 = vcmp.gt.f32.partialorder %v426_v42, 0.0 }
 0x109   : > { %v555_v48 = vsel %vm491_vm8, %v426_v42, %v523_v43 }
 0x10a   : > { %v627_v53 = vrot.slane %v555_v48, 7  ;;  %v724_v54 = vrot.slane %v555_v48, 1  ;;  %812 = vrot.lane.b32.xlu0 %v555_v48, %s2317_s28 }
 0x10c   : > { %v428_v56 = vpop.f32.mrf.mxu0  ;;  %v901_v57 = vpop.permute.xlu2 %900  ;;  %v725_v58 = vsel %vm701_vm4, %v723_v50, %v724_v54  ;;  %v773_v61 = vsel %vm701_vm4, %v724_v54, 0.0  ;;  %v2600_v63 = vsel %vm604_vm5, %v626_v49, %v627_v53 }
 0x10d   : > { %v429_v0 = vadd.f32 %v2406_v17, %v428_v56  ;;  %v1026_v1 = vsel %vm262_vm1, %v994_v55, %v901_v57  ;;  %922 = vrot.lane.b32.xlu2 %v725_v58, %s2318_s29  ;;  %924 = vrot.lane.b32.xlu1 %v773_v61, %s2318_s29 }
 0x10e   : > { %1060 = vst.msk [vmem:[#allocation2 + $0x28] sm:$0xff] %vm1056_vm15, %v1026_v1 }
 0x10f   : > { %v895_v3 = vpop.permute.xlu1 %894  ;;  %v524_v4 = vmul.f32 0.1, %v429_v0  ;;  %vm492_vm10 = vcmp.gt.f32.partialorder %v429_v0, 0.0 }
 0x110   : > { %v1023_v7 = vsel %vm262_vm1, %v991_v2, %v895_v3 }
 0x111   : > { %1057 = vst.msk [vmem:[#allocation2 + $0x10] sm:$0xff] %vm1056_vm15, %v1023_v7  ;;  %v2613_v9 = vsel %vm492_vm10, %v429_v0, %v524_v4  ;;  %v687_v7 = vsel %vm604_vm5, 0.0, %v611_v62 }
 0x112   : > { %v629_v16 = vrot.slane %v2613_v9, 7  ;;  %v726_v18 = vrot.slane %v2613_v9, 1 }
 0x114   : > { %v431_v8 = vpop.f32.mrf.mxu0  ;;  %v787_v28 = vpop.permute.xlu0 %786 }
 0x115   : > { %v432_v11 = vadd.f32 %v2406_v17, %v431_v8  ;;  %814 = vrot.lane.b32.xlu2 %v2613_v9, %s2317_s28  ;;  %v993_v33 = vsel %vm990_vm9, %v686_v31, %v787_v28  ;;  %v791_v41 = vpop.permute.xlu2 %790 }
 0x117   : > { %v525_v22 = vmul.f32 0.1, %v432_v11  ;;  %vm493_vm11 = vcmp.gt.f32.partialorder %v432_v11, 0.0  ;;  %v897_v42 = vpop.permute.xlu1 %896 }
 0x118   : > { %v1127_v13 = vld [vmem:[#allocation2 + $0x10] sm:$0xff] }
 0x119   : > { %2192 = vmatmul.msk.f32.vlgmr.msra.gmra.mxu1 %vm1056_vm15, %v1127_v13  ;;  %2227 = vmatmul.msk.f32.gmra.mxu2 %vm1056_vm15, %v1127_v13  ;;  %v557_v14 = vsel %vm493_vm11, %v432_v11, %v525_v22  ;;  %v995_v11 = vsel %vm990_vm9, %v687_v7, %v791_v41 }
 0x11a   : > { %v630_v19 = vrot.slane %v557_v14, 7  ;;  %816 = vrot.lane.b32.xlu1 %v557_v14, %s2317_s28  ;;  %v727_v21 = vrot.slane %v557_v14, 1  ;;  %v1588_v14 = vld [vmem:[#allocation2 + $0x28] sm:$0xff] }
 0x11c   : > { %v434_v23 = vpop.f32.mrf.mxu0  ;;  %v774_v24 = vsel %vm701_vm4, %v727_v21, 0.0  ;;  %v728_v26 = vsel %vm701_vm4, %v726_v18, %v727_v21  ;;  %v2628_v27 = vsel %vm604_vm5, %v629_v16, %v630_v19 }
 0x11d   : > { %v435_v29 = vadd.f32 %v2406_v17, %v434_v23  ;;  %928 = vrot.lane.b32.xlu2 %v774_v24, %s2318_s29  ;;  %926 = vrot.lane.b32.xlu0 %v728_v26, %s2318_s29  ;;  %v905_v2 = vpop.permute.xlu2 %904 }
 0x11f   : > { %v899_v34 = vpop.permute.xlu0 %898  ;;  %v526_v37 = vmul.f32 0.1, %v435_v29  ;;  %vm494_vm12 = vcmp.gt.f32.partialorder %v435_v29, 0.0 }
 0x120   : > { %v1025_v39 = vsel %vm262_vm1, %v993_v33, %v899_v34 }
 0x121   : > { %1059 = vst.msk [vmem:[#allocation2 + $0x20] sm:$0xff] %vm1056_vm15, %v1025_v39  ;;  %v2639_v44 = vsel %vm494_vm12, %v435_v29, %v526_v37 }
 0x122   : > { %v632_v55 = vrot.slane %v2639_v44, 7  ;;  %v729_v56 = vrot.slane %v2639_v44, 1 }
 0x124   : > { %v437_v43 = vpop.f32.mrf.mxu0 }
 0x125   : > { %v438_v47 = vadd.f32 %v2406_v17, %v437_v43  ;;  %818 = vrot.lane.b32.xlu0 %v2639_v44, %s2317_s28  ;;  %v797_v34 = vpop.permute.xlu2 %796 }
 0x127   : > { %v527_v38 = vmul.f32 0.1, %v438_v47  ;;  %v785_v45 = vpop.permute.xlu0 %784  ;;  %vm495_vm13 = vcmp.gt.f32.partialorder %v438_v47, 0.0 }
 0x128   : > { %v992_v48 = vsel %vm990_vm9, %v2425_v35, %v785_v45  ;;  %v1587_v50 = vld [vmem:[#allocation2 + $0x20] sm:$0xff] }
 0x129   : > { %v1024_v53 = vsel %vm262_vm1, %v992_v48, %v897_v42  ;;  %2259 = vmatmul.msk.f32.vlgmr.msra.gmra.mxu3 %vm1056_vm15, %v1587_v50  ;;  %v559_v54 = vsel %vm495_vm13, %v438_v47, %v527_v38  ;;  %v998_v47 = vsel %vm990_vm9, %v2493_v25, %v797_v34  ;;  %v688_v38 = vsel %vm604_vm5, 0.0, %v614_v15 }
 0x12a   : > { %1058 = vst.msk [vmem:[#allocation2 + $0x18] sm:$0xff] %vm1056_vm15, %v1024_v53  ;;  %v633_v57 = vrot.slane %v559_v54, 7  ;;  %820 = vrot.lane.b32.xlu2 %v559_v54, %s2317_s28  ;;  %v730_v58 = vrot.slane %v559_v54, 1 }
 0x12c   : > { %v440_v61 = vpop.f32.mrf.mxu0  ;;  %v793_v0 = vpop.permute.xlu1 %792  ;;  %v775_v35 = vsel %vm701_vm4, %v730_v58, 0.0  ;;  %v731_v1 = vsel %vm701_vm4, %v729_v56, %v730_v58  ;;  %v2657_v52 = vsel %vm604_vm5, %v632_v55, %v633_v57 }
 0x12d   : > { %v441_v3 = vadd.f32 %v2406_v17, %v440_v61  ;;  %v996_v4 = vsel %vm990_vm9, %v2470_v5, %v793_v0  ;;  %932 = vrot.lane.b32.xlu0 %v775_v35, %s2318_s29  ;;  %930 = vrot.lane.b32.xlu1 %v731_v1, %s2318_s29  ;;  %v689_v61 = vsel %vm604_vm5, 0.0, %v617_v36 }
 0x12e   : > { %v1028_v8 = vsel %vm262_vm1, %v996_v4, %v905_v2 }
 0x12f   : > { %1062 = vst.msk [vmem:[#allocation2 + $0x38] sm:$0xff] %vm1056_vm15, %v1028_v8  ;;  %v903_v22 = vpop.permute.xlu0 %902  ;;  %v528_v28 = vmul.f32 0.1, %v441_v3  ;;  %vm496_vm14 = vcmp.gt.f32.partialorder %v441_v3, 0.0 }
 0x130   : > { %v1027_v13 = vsel %vm262_vm1, %v995_v11, %v903_v22 }
 0x131   : > { %1061 = vst.msk [vmem:[#allocation2 + $0x30] sm:$0xff] %vm1056_vm15, %v1027_v13  ;;  %2260 = vmatmul.msk.f32.gmra.mxu3 %vm1056_vm15, %v1588_v14  ;;  %v1128_v5 = vld [vmem:[#allocation2 + $0x18] sm:$0xff]  ;;  %v2675_v62 = vsel %vm496_vm14, %v441_v3, %v528_v28 }
 0x132   : > { %2193 = vmatmul.msk.f32.gmra.mxu1 %vm1056_vm15, %v1128_v5  ;;  %2228 = vmatmul.msk.f32.gmra.mxu2 %vm1056_vm15, %v1128_v5  ;;  %v635_v26 = vrot.slane %v2675_v62, 7  ;;  %v732_v29 = vrot.slane %v2675_v62, 1 }
 0x134   : > { %v443_v59 = vpop.f32.mrf.mxu0 }
 0x135   : > { %v444_v18 = vadd.f32 %v2406_v17, %v443_v59  ;;  %822 = vrot.lane.b32.xlu1 %v2675_v62, %s2317_s28  ;;  %v2908_v62 = vld [vmem:[%s3149_s4] ss:$0 sm:$0xff] }
 0x136   : > { %v1590_v56 = vld [vmem:[#allocation2 + $0x38] sm:$0xff] }
 0x137   : > { %v529_v19 = vmul.f32 0.1, %v444_v18  ;;  %v795_v21 = vpop.permute.xlu0 %794  ;;  %vm497_vm0 = vcmp.gt.f32.partialorder %v444_v18, 0.0  ;;  %v911_v35 = vpop.permute.xlu2 %910 }
 0x138   : > { %v1589_v23 = vld [vmem:[#allocation2 + $0x30] sm:$0xff]  ;;  %v997_v48 = vsel %vm990_vm9, %v688_v38, %v795_v21 }
 0x139   : > { %2261 = vmatmul.msk.f32.gmra.mxu3 %vm1056_vm15, %v1589_v23  ;;  %v561_v24 = vsel %vm497_vm0, %v444_v18, %v529_v19 }
 0x13a   : > { %v636_v31 = vrot.slane %v561_v24, 7  ;;  %v733_v33 = vrot.slane %v561_v24, 1  ;;  %824 = vrot.lane.b32.xlu0 %v561_v24, %s2317_s28  ;;  %2194 = vmatmul.msk.f32.gmra.mxu1 %vm1056_vm15, %v1587_v50 }
 0x13b   : > { %2229 = vmatmul.msk.f32.gmra.mxu2 %vm1056_vm15, %v1587_v50 }
 0x13c   : > { %v446_v37 = vpop.f32.mrf.mxu0  ;;  %v734_v39 = vsel %vm701_vm4, %v732_v29, %v733_v33  ;;  %v776_v41 = vsel %vm701_vm4, %v733_v33, 0.0  ;;  %v2691_v42 = vsel %vm604_vm5, %v635_v26, %v636_v31 }
 0x13d   : > { %v447_v43 = vadd.f32 %v2406_v17, %v446_v37  ;;  %934 = vrot.lane.b32.xlu2 %v734_v39, %s2318_s29  ;;  %936 = vrot.lane.b32.xlu1 %v776_v41, %s2318_s29 }
 0x13f   : > { %v909_v45 = vpop.permute.xlu0 %908  ;;  %v530_v50 = vmul.f32 0.1, %v447_v43  ;;  %v907_v54 = vpop.permute.xlu1 %906  ;;  %vm498_vm2 = vcmp.gt.f32.partialorder %v447_v43, 0.0 }
 0x140   : > { %v1030_v53 = vsel %vm262_vm1, %v998_v47, %v909_v45  ;;  %v1029_v57 = vsel %vm262_vm1, %v997_v48, %v907_v54  ;;  %v803_v24 = vpop.permute.xlu2 %802 }
 0x141   : > { %1064 = vst.msk [vmem:[#allocation2 + $0x48] sm:$0xff] %vm1056_vm15, %v1030_v53  ;;  %2262 = vmatmul.msk.f32.gmra.mxu3 %vm1056_vm15, %v1590_v56  ;;  %v2709_v15 = vsel %vm498_vm2, %v447_v43, %v530_v50 }
 0x142   : > { %1063 = vst.msk [vmem:[#allocation2 + $0x40] sm:$0xff] %vm1056_vm15, %v1029_v57  ;;  %2195 = vmatmul.msk.f32.gmra.mxu1 %vm1056_vm15, %v1588_v14  ;;  %v638_v1 = vrot.slane %v2709_v15, 7  ;;  %v735_v7 = vrot.slane %v2709_v15, 1 }
 0x143   : > { %2230 = vmatmul.msk.f32.gmra.mxu2 %vm1056_vm15, %v1588_v14 }
 0x144   : > { %v449_v10 = vpop.f32.mrf.mxu0 }
 0x145   : > { %v450_v25 = vadd.f32 %v2406_v17, %v449_v10  ;;  %826 = vrot.lane.b32.xlu2 %v2709_v15, %s2317_s28  ;;  %v690_v10 = vsel %vm604_vm5, 0.0, %v620_v60 }
 0x147   : > { %v531_v58 = vmul.f32 0.1, %v450_v25  ;;  %vm499_vm3 = vcmp.gt.f32.partialorder %v450_v25, 0.0  ;;  %v799_v0 = vpop.permute.xlu1 %798 }
 0x148   : > { %v999_v2 = vsel %vm990_vm9, %v689_v61, %v799_v0  ;;  %v917_v54 = vpop.permute.xlu2 %916 }
 0x149   : > { %v1591_v3 = vld [vmem:[#allocation2 + $0x40] sm:$0xff]  ;;  %v563_v4 = vsel %vm499_vm3, %v450_v25, %v531_v58  ;;  %v1031_v8 = vsel %vm262_vm1, %v999_v2, %v911_v35  ;;  %v1001_v58 = vsel %vm990_vm9, %v690_v10, %v803_v24 }
 0x14a   : > { %2263 = vmatmul.msk.f32.gmra.mxu3 %vm1056_vm15, %v1591_v3  ;;  %v639_v11 = vrot.slane %v563_v4, 7  ;;  %828 = vrot.lane.b32.xlu1 %v563_v4, %s2317_s28  ;;  %v736_v30 = vrot.slane %v563_v4, 1  ;;  %1065 = vst.msk [vmem:[#allocation2 + $0x50] sm:$0xff] %vm1056_vm15, %v1031_v8 }
 0x14b   : > { %2196 = vmatmul.msk.f32.gmra.mxu1 %vm1056_vm15, %v1589_v23  ;;  %2231 = vmatmul.msk.f32.gmra.mxu2 %vm1056_vm15, %v1589_v23  ;;  %v1592_v23 = vld [vmem:[#allocation2 + $0x48] sm:$0xff] }
 0x14c   : > { %v452_v36 = vpop.f32.mrf.mxu0  ;;  %v777_v22 = vsel %vm701_vm4, %v736_v30, 0.0  ;;  %v737_v28 = vsel %vm701_vm4, %v735_v7, %v736_v30  ;;  %v2731_v13 = vsel %vm604_vm5, %v638_v1, %v639_v11  ;;  %v801_v5 = vpop.permute.xlu0 %800 }
 0x14d   : > { %v453_v14 = vadd.f32 %v2406_v17, %v452_v36  ;;  %940 = vrot.lane.b32.xlu2 %v777_v22, %s2318_s29  ;;  %938 = vrot.lane.b32.xlu0 %v737_v28, %s2318_s29  ;;  %v1000_v18 = vsel %vm990_vm9, %v2515_v46, %v801_v5 }
 0x14f   : > { %v532_v59 = vmul.f32 0.1, %v453_v14  ;;  %v913_v19 = vpop.permute.xlu1 %912  ;;  %vm500_vm6 = vcmp.gt.f32.partialorder %v453_v14, 0.0 }
 0x150   : > { %v1032_v21 = vsel %vm262_vm1, %v1000_v18, %v913_v19 }
 0x151   : > { %1066 = vst.msk [vmem:[#allocation2 + $0x58] sm:$0xff] %vm1056_vm15, %v1032_v21  ;;  %v2743_v31 = vsel %vm500_vm6, %v453_v14, %v532_v59  ;;  %v1593_v34 = vld [vmem:[#allocation2 + $0x50] sm:$0xff] }
 0x152   : > { %2264 = vmatmul.msk.f32.gmra.mxu3 %vm1056_vm15, %v1592_v23  ;;  %v641_v39 = vrot.slane %v2743_v31, 7  ;;  %v738_v41 = vrot.slane %v2743_v31, 1 }
 0x153   : > { %2197 = vmatmul.msk.f32.gmra.mxu1 %vm1056_vm15, %v1590_v56  ;;  %2232 = vmatmul.msk.f32.gmra.mxu2 %vm1056_vm15, %v1590_v56 }
 0x154   : > { %v455_v29 = vpop.f32.mrf.mxu0  ;;  %v809_v28 = vpop.permute.xlu2 %808 }
 0x155   : > { %v456_v33 = vadd.f32 %v2406_v17, %v455_v29  ;;  %830 = vrot.lane.b32.xlu0 %v2743_v31, %s2317_s28  ;;  %v1004_v21 = vsel %vm990_vm9, %v2573_v32, %v809_v28  ;;  %v2001_v31 = vld [vmem:[%s2369_s25 + $0x20] sm:$0xff] }
 0x157   : > { %v533_v46 = vmul.f32 0.1, %v456_v33  ;;  %vm501_vm7 = vcmp.gt.f32.partialorder %v456_v33, 0.0 }
 0x159   : > { %v565_v37 = vsel %vm501_vm7, %v456_v33, %v533_v46 }
 0x15a   : > { %2265 = vmatmul.msk.f32.gmra.mxu3 %vm1056_vm15, %v1593_v34  ;;  %v642_v43 = vrot.slane %v565_v37, 7  ;;  %832 = vrot.lane.b32.xlu2 %v565_v37, %s2317_s28  ;;  %v739_v47 = vrot.slane %v565_v37, 1 }
 0x15b   : > { %2198 = vmatmul.msk.f32.gmra.mxu1 %vm1056_vm15, %v1591_v3  ;;  %2233 = vmatmul.msk.f32.gmra.mxu2 %vm1056_vm15, %v1591_v3 }
 0x15c   : > { %v458_v38 = vpop.f32.mrf.mxu0  ;;  %v805_v45 = vpop.permute.xlu1 %804  ;;  %v778_v48 = vsel %vm701_vm4, %v739_v47, 0.0  ;;  %v740_v50 = vsel %vm701_vm4, %v738_v41, %v739_v47  ;;  %v2759_v53 = vsel %vm604_vm5, %v641_v39, %v642_v43  ;;  %v692_v47 = vsel %vm604_vm5, 0.0, %v626_v49 }
 0x15d   : > { %v459_v56 = vadd.f32 %v2406_v17, %v458_v38  ;;  %v1002_v57 = vsel %vm990_vm9, %v2546_v6, %v805_v45  ;;  %944 = vrot.lane.b32.xlu0 %v778_v48, %s2318_s29  ;;  %942 = vrot.lane.b32.xlu1 %v740_v50, %s2318_s29  ;;  %v1594_v6 = vld [vmem:[#allocation2 + $0x58] sm:$0xff] }
 0x15e   : > { %v1034_v25 = vsel %vm262_vm1, %v1002_v57, %v917_v54 }
 0x15f   : > { %1068 = vst.msk [vmem:[#allocation2 + $0x68] sm:$0xff] %vm1056_vm15, %v1034_v25  ;;  %v915_v61 = vpop.permute.xlu0 %914  ;;  %v534_v0 = vmul.f32 0.1, %v459_v56  ;;  %vm502_vm8 = vcmp.gt.f32.partialorder %v459_v56, 0.0 }
 0x160   : > { %v1033_v35 = vsel %vm262_vm1, %v1001_v58, %v915_v61 }
 0x161   : > { %1067 = vst.msk [vmem:[#allocation2 + $0x60] sm:$0xff] %vm1056_vm15, %v1033_v35  ;;  %v2777_v60 = vsel %vm502_vm8, %v459_v56, %v534_v0 }
 0x162   : > { %2266 = vmatmul.msk.f32.gmra.mxu3 %vm1056_vm15, %v1594_v6  ;;  %v644_v11 = vrot.slane %v2777_v60, 7  ;;  %v741_v30 = vrot.slane %v2777_v60, 1 }
 0x163   : > { %2199 = vmatmul.msk.f32.gmra.mxu1 %vm1056_vm15, %v1592_v23  ;;  %2234 = vmatmul.msk.f32.gmra.mxu2 %vm1056_vm15, %v1592_v23  ;;  %v691_v23 = vsel %vm604_vm5, 0.0, %v623_v20 }
 0x164   : > { %v461_v51 = vpop.f32.mrf.mxu0 }
 0x165   : > { %v462_v2 = vadd.f32 %v2406_v17, %v461_v51  ;;  %834 = vrot.lane.b32.xlu1 %v2777_v60, %s2317_s28 }
 0x166   : > { %v1596_v41 = vld [vmem:[#allocation2 + $0x68] sm:$0xff] }
 0x167   : > { %v535_v3 = vmul.f32 0.1, %v462_v2  ;;  %v807_v4 = vpop.permute.xlu0 %806  ;;  %vm503_vm10 = vcmp.gt.f32.partialorder %v462_v2, 0.0  ;;  %v923_v45 = vpop.permute.xlu2 %922 }
 0x168   : > { %v1595_v7 = vld [vmem:[#allocation2 + $0x60] sm:$0xff]  ;;  %v1003_v29 = vsel %vm990_vm9, %v691_v23, %v807_v4 }
 0x169   : > { %v567_v8 = vsel %vm503_vm10, %v462_v2, %v535_v3 }
 0x16a   : > { %2267 = vmatmul.msk.f32.gmra.mxu3 %vm1056_vm15, %v1595_v7  ;;  %v645_v36 = vrot.slane %v567_v8, 7  ;;  %v742_v22 = vrot.slane %v567_v8, 1  ;;  %836 = vrot.lane.b32.xlu0 %v567_v8, %s2317_s28 }
 0x16b   : > { %2200 = vmatmul.msk.f32.gmra.mxu1 %vm1056_vm15, %v1593_v34  ;;  %2235 = vmatmul.msk.f32.gmra.mxu2 %vm1056_vm15, %v1593_v34 }
 0x16c   : > { %v464_v14 = vpop.f32.mrf.mxu0  ;;  %v743_v5 = vsel %vm701_vm4, %v741_v30, %v742_v22  ;;  %v779_v59 = vsel %vm701_vm4, %v742_v22, 0.0  ;;  %v2793_v18 = vsel %vm604_vm5, %v644_v11, %v645_v36 }
 0x16d   : > { %v465_v19 = vadd.f32 %v2406_v17, %v464_v14  ;;  %946 = vrot.lane.b32.xlu2 %v743_v5, %s2318_s29  ;;  %948 = vrot.lane.b32.xlu1 %v779_v59, %s2318_s29 }
 0x16f   : > { %v921_v24 = vpop.permute.xlu0 %920  ;;  %v536_v33 = vmul.f32 0.1, %v465_v19  ;;  %v919_v34 = vpop.permute.xlu1 %918  ;;  %vm504_vm11 = vcmp.gt.f32.partialorder %v465_v19, 0.0 }
 0x170   : > { %v1036_v46 = vsel %vm262_vm1, %v1004_v21, %v921_v24  ;;  %v1035_v37 = vsel %vm262_vm1, %v1003_v29, %v919_v34  ;;  %v815_v8 = vpop.permute.xlu2 %814 }
 0x171   : > { %1070 = vst.msk [vmem:[#allocation2 + $0x78] sm:$0xff] %vm1056_vm15, %v1036_v46  ;;  %v2811_v20 = vsel %vm504_vm11, %v465_v19, %v536_v33 }
 0x172   : > { %1069 = vst.msk [vmem:[#allocation2 + $0x70] sm:$0xff] %vm1056_vm15, %v1035_v37  ;;  %2268 = vmatmul.msk.f32.gmra.mxu3 %vm1056_vm15, %v1596_v41  ;;  %v647_v48 = vrot.slane %v2811_v20, 7  ;;  %v744_v57 = vrot.slane %v2811_v20, 1  ;;  %v693_v37 = vsel %vm604_vm5, 0.0, %v629_v16 }
 0x173   : > { %2201 = vmatmul.msk.f32.gmra.mxu1 %vm1056_vm15, %v1594_v6  ;;  %2236 = vmatmul.msk.f32.gmra.mxu2 %vm1056_vm15, %v1594_v6 }
 0x174   : > { %v467_v12 = vpop.f32.mrf.mxu0 }
 0x175   : > { %v468_v32 = vadd.f32 %v2406_v17, %v467_v12  ;;  %838 = vrot.lane.b32.xlu2 %v2811_v20, %s2317_s28  ;;  %v1007_v12 = vsel %vm990_vm9, %v693_v37, %v815_v8 }
 0x177   : > { %v537_v43 = vmul.f32 0.1, %v468_v32  ;;  %vm505_vm12 = vcmp.gt.f32.partialorder %v468_v32, 0.0  ;;  %v811_v38 = vpop.permute.xlu1 %810 }
 0x178   : > { %v1005_v50 = vsel %vm990_vm9, %v692_v47, %v811_v38  ;;  %v929_v46 = vpop.permute.xlu2 %928  ;;  %v1490_v47 = vpop.f32.mrf.mxu2 }
 0x179   : > { %v1597_v54 = vld [vmem:[#allocation2 + $0x70] sm:$0xff]  ;;  %v569_v56 = vsel %vm505_vm12, %v468_v32, %v537_v43  ;;  %v1037_v10 = vsel %vm262_vm1, %v1005_v50, %v923_v45  ;;  %v694_v50 = vsel %vm604_vm5, 0.0, %v632_v55  ;;  %v695_v55 = vsel %vm604_vm5, 0.0, %v635_v26 }
 0x17a   : > { %2269 = vmatmul.msk.f32.gmra.mxu3 %vm1056_vm15, %v1597_v54  ;;  %v648_v25 = vrot.slane %v569_v56, 7  ;;  %840 = vrot.lane.b32.xlu1 %v569_v56, %s2317_s28  ;;  %v745_v40 = vrot.slane %v569_v56, 1  ;;  %1071 = vst.msk [vmem:[#allocation2 + $0x80] sm:$0xff] %vm1056_vm15, %v1037_v10 }
 0x17b   : > { %2202 = vmatmul.msk.f32.gmra.mxu1 %vm1056_vm15, %v1595_v7  ;;  %2237 = vmatmul.msk.f32.gmra.mxu2 %vm1056_vm15, %v1595_v7  ;;  %v1598_v7 = vld [vmem:[#allocation2 + $0x78] sm:$0xff] }
 0x17c   : > { %v470_v49 = vpop.f32.mrf.mxu0  ;;  %v780_v58 = vsel %vm701_vm4, %v745_v40, 0.0  ;;  %v746_v61 = vsel %vm701_vm4, %v744_v57, %v745_v40  ;;  %v2833_v0 = vsel %vm604_vm5, %v647_v48, %v648_v25  ;;  %v813_v6 = vpop.permute.xlu0 %812 }
 0x17d   : > { %v471_v35 = vadd.f32 %v2406_v17, %v470_v49  ;;  %952 = vrot.lane.b32.xlu2 %v780_v58, %s2318_s29  ;;  %950 = vrot.lane.b32.xlu0 %v746_v61, %s2318_s29  ;;  %v1006_v2 = vsel %vm990_vm9, %v2600_v63, %v813_v6  ;;  %v2308_v63 = vld [vmem:[%s3148_s3] ss:$0 sm:$0xff] }
 0x17f   : > { %v538_v51 = vmul.f32 0.1, %v471_v35  ;;  %v925_v3 = vpop.permute.xlu1 %924  ;;  %vm506_vm13 = vcmp.gt.f32.partialorder %v471_v35, 0.0 }
 0x180   : > { %v1038_v4 = vsel %vm262_vm1, %v1006_v2, %v925_v3 }
 0x181   : > { %1072 = vst.msk [vmem:[#allocation2 + $0x88] sm:$0xff] %vm1056_vm15, %v1038_v4  ;;  %v2845_v30 = vsel %vm506_vm13, %v471_v35, %v538_v51  ;;  %v1599_v28 = vld [vmem:[#allocation2 + $0x80] sm:$0xff] }
 0x182   : > { %2270 = vmatmul.msk.f32.gmra.mxu3 %vm1056_vm15, %v1598_v7  ;;  %v650_v5 = vrot.slane %v2845_v30, 7  ;;  %v747_v59 = vrot.slane %v2845_v30, 1 }
 0x183   : > { %2203 = vmatmul.msk.f32.gmra.mxu1 %vm1056_vm15, %v1596_v41  ;;  %2238 = vmatmul.msk.f32.gmra.mxu2 %vm1056_vm15, %v1596_v41 }
 0x184   : > { %v473_v17 = vpop.f32.mrf.mxu0  ;;  %v821_v38 = vpop.permute.xlu2 %820 }
 0x185   : > { %v474_v36 = vadd.f32 %v2308_v63, %v473_v17  ;;  %842 = vrot.lane.b32.xlu0 %v2845_v30, %s2317_s28  ;;  %v1010_v45 = vsel %vm990_vm9, %v2657_v52, %v821_v38  ;;  %v1493_v52 = vpop.f32.mrf.mxu2 }
 0x187   : > { %v539_v22 = vmul.f32 0.1, %v474_v36  ;;  %vm507_vm14 = vcmp.gt.f32.partialorder %v474_v36, 0.0 }
 0x189   : > { %v571_v14 = vsel %vm507_vm14, %v474_v36, %v539_v22  ;;  %v1997_v22 = vld [vmem:[%s2369_s25] sm:$0xff] }
 0x18a   : > { %2271 = vmatmul.msk.f32.gmra.mxu3 %vm1056_vm15, %v1599_v28  ;;  %v651_v19 = vrot.slane %v571_v14, 7  ;;  %844 = vrot.lane.b32.xlu2 %v571_v14, %s2317_s28  ;;  %v748_v21 = vrot.slane %v571_v14, 1 }
 0x18b   : > { %2204 = vmatmul.msk.f32.gmra.mxu1 %vm1056_vm15, %v1597_v54  ;;  %2239 = vmatmul.msk.f32.gmra.mxu2 %vm1056_vm15, %v1597_v54 }
 0x18c   : > { %v817_v23 = vpop.permute.xlu1 %816  ;;  %v781_v24 = vsel %vm701_vm4, %v748_v21, 0.0  ;;  %v749_v29 = vsel %vm701_vm4, %v747_v59, %v748_v21  ;;  %v2863_v33 = vsel %vm604_vm5, %v650_v5, %v651_v19 }
 0x18d   : > { %v1008_v34 = vsel %vm990_vm9, %v2628_v27, %v817_v23  ;;  %956 = vrot.lane.b32.xlu0 %v781_v24, %s2318_s29  ;;  %954 = vrot.lane.b32.xlu1 %v749_v29, %s2318_s29  ;;  %v1600_v27 = vld [vmem:[#allocation2 + $0x88] sm:$0xff] }
 0x18e   : > { %v1040_v41 = vsel %vm262_vm1, %v1008_v34, %v929_v46 }
 0x18f   : > { %1074 = vst.msk [vmem:[#allocation2 + $0x98] sm:$0xff] %vm1056_vm15, %v1040_v41  ;;  %v927_v32 = vpop.permute.xlu0 %926  ;;  %v1998_v41 = vld [vmem:[%s2369_s25 + $0x8] sm:$0xff] }
 0x190   : > { %v1039_v43 = vsel %vm262_vm1, %v1007_v12, %v927_v32 }
 0x191   : > { %1073 = vst.msk [vmem:[#allocation2 + $0x90] sm:$0xff] %vm1056_vm15, %v1039_v43 }
 0x192   : > { %2272 = vmatmul.msk.f32.gmra.mxu3 %vm1056_vm15, %v1600_v27 }
 0x193   : > { %2205 = vmatmul.msk.f32.gmra.mxu1 %vm1056_vm15, %v1598_v7  ;;  %2240 = vmatmul.msk.f32.gmra.mxu2 %vm1056_vm15, %v1598_v7 }
 0x196   : > { %v1602_v40 = vld [vmem:[#allocation2 + $0x98] sm:$0xff]  ;;  %v1278_v44 = vpop.f32.mrf.mxu1 }
 0x197   : > { %v819_v9 = vpop.permute.xlu0 %818  ;;  %v935_v58 = vpop.permute.xlu2 %934  ;;  %v1491_v51 = vadd.f32 %v1490_v47, %v1278_v44 }
 0x198   : > { %v1601_v16 = vld [vmem:[#allocation2 + $0x90] sm:$0xff]  ;;  %v1009_v56 = vsel %vm990_vm9, %v694_v50, %v819_v9  ;;  %v696_v50 = vsel %vm604_vm5, 0.0, %v638_v1 }
 0x19a   : > { %2273 = vmatmul.msk.f32.gmra.mxu3 %vm1056_vm15, %v1601_v16 }
 0x19b   : > { %2206 = vmatmul.msk.f32.gmra.mxu1 %vm1056_vm15, %v1599_v28  ;;  %2241 = vmatmul.msk.f32.gmra.mxu2 %vm1056_vm15, %v1599_v28 }
 0x19c   : > { %v1496_v2 = vpop.f32.mrf.mxu2 }
 0x19f   : > { %v933_v54 = vpop.permute.xlu0 %932  ;;  %v931_v10 = vpop.permute.xlu1 %930 }
 0x1a0   : > { %v1042_v57 = vsel %vm262_vm1, %v1010_v45, %v933_v54  ;;  %v1041_v25 = vsel %vm262_vm1, %v1009_v56, %v931_v10  ;;  %v827_v59 = vpop.permute.xlu2 %826 }
 0x1a1   : > { %1076 = vst.msk [vmem:[#allocation2 + $0xa8] sm:$0xff] %vm1056_vm15, %v1042_v57  ;;  %v1013_v57 = vsel %vm990_vm9, %v696_v50, %v827_v59  ;;  %v697_v59 = vsel %vm604_vm5, 0.0, %v641_v39 }
 0x1a2   : > { %1075 = vst.msk [vmem:[#allocation2 + $0xa0] sm:$0xff] %vm1056_vm15, %v1041_v25  ;;  %2274 = vmatmul.msk.f32.gmra.mxu3 %vm1056_vm15, %v1602_v40 }
 0x1a3   : > { %2207 = vmatmul.msk.f32.gmra.mxu1 %vm1056_vm15, %v1600_v27  ;;  %2242 = vmatmul.msk.f32.gmra.mxu2 %vm1056_vm15, %v1600_v27 }
 0x1a7   : > { %v823_v49 = vpop.permute.xlu1 %822 }
 0x1a8   : > { %v1011_v61 = vsel %vm990_vm9, %v695_v55, %v823_v49  ;;  %v1604_v14 = vld [vmem:[#allocation2 + $0xa8] sm:$0xff]  ;;  %v941_v47 = vpop.permute.xlu2 %940 }
 0x1a9   : > { %v1603_v35 = vld [vmem:[#allocation2 + $0xa0] sm:$0xff]  ;;  %v1043_v6 = vsel %vm262_vm1, %v1011_v61, %v935_v58 }
 0x1aa   : > { %2275 = vmatmul.msk.f32.gmra.mxu3 %vm1056_vm15, %v1603_v35  ;;  %1077 = vst.msk [vmem:[#allocation2 + $0xb0] sm:$0xff] %vm1056_vm15, %v1043_v6 }
 0x1ab   : > { %2208 = vmatmul.msk.f32.gmra.mxu1 %vm1056_vm15, %v1601_v16  ;;  %2243 = vmatmul.msk.f32.gmra.mxu2 %vm1056_vm15, %v1601_v16 }
 0x1ac   : > { %v1737_v26 = vpop.f32.mrf.mxu3  ;;  %v825_v4 = vpop.permute.xlu0 %824 }
 0x1ad   : > { %v1833_v3 = vadd.f32 %v1737_v26, %v1491_v51  ;;  %v1012_v17 = vsel %vm990_vm9, %v2691_v42, %v825_v4  ;;  %v2000_v4 = vld [vmem:[%s2369_s25 + $0x18] sm:$0xff] }
 0x1af   : > { %v1869_v7 = vadd.f32 %v2908_v62, %v1833_v3  ;;  %v1281_v8 = vpop.f32.mrf.mxu1  ;;  %v937_v63 = vpop.permute.xlu1 %936 }
 0x1b0   : > { %v1044_v28 = vsel %vm262_vm1, %v1012_v17, %v937_v63  ;;  %v1494_v19 = vadd.f32 %v1493_v52, %v1281_v8  ;;  %v1999_v52 = vld [vmem:[%s2369_s25 + $0x10] sm:$0xff] }
 0x1b1   : > { %vm1901_vm4 = vcmp.gt.f32.partialorder %v1869_v7, 0.0  ;;  %v1933_v36 = vmul.f32 0.1, %v1869_v7  ;;  %1078 = vst.msk [vmem:[#allocation2 + $0xb8] sm:$0xff] %vm1056_vm15, %v1044_v28  ;;  %v1605_v12 = vld [vmem:[#allocation2 + $0xb0] sm:$0xff] }
 0x1b2   : > { %2276 = vmatmul.msk.f32.gmra.mxu3 %vm1056_vm15, %v1604_v14 }
 0x1b3   : > { %v1965_v42 = vsel %vm1901_vm4, %v1869_v7, %v1933_v36  ;;  %2209 = vmatmul.msk.f32.gmra.mxu1 %vm1056_vm15, %v1602_v40  ;;  %2244 = vmatmul.msk.f32.gmra.mxu2 %vm1056_vm15, %v1602_v40 }
 0x1b4   : > { %v2029_v21 = vadd.f32 %v1997_v22, %v1965_v42  ;;  %v1740_v23 = vpop.f32.mrf.mxu3  ;;  %v833_v8 = vpop.permute.xlu2 %832 }
 0x1b5   : > { %v1834_v24 = vadd.f32 %v1740_v23, %v1494_v19  ;;  %v1499_v29 = vpop.f32.mrf.mxu2 }
 0x1b6   : > { %2061 = vst.msk [vmem:[%s2922_s17] sm:$0xff] %vm262_vm1, %v2029_v21 }
 0x1b7   : > { %v1870_v46 = vadd.f32 %v2908_v62, %v1834_v24  ;;  %v1284_v34 = vpop.f32.mrf.mxu1 }
 0x1b8   : > { %v1497_v43 = vadd.f32 %v1496_v2, %v1284_v34  ;;  %v1606_v1 = vld [vmem:[#allocation2 + $0xb8] sm:$0xff] }
 0x1b9   : > { %vm1902_vm0 = vcmp.gt.f32.partialorder %v1870_v46, 0.0  ;;  %v1934_v37 = vmul.f32 0.1, %v1870_v46 }
 0x1ba   : > { %2277 = vmatmul.msk.f32.gmra.mxu3 %vm1056_vm15, %v1605_v12 }
 0x1bb   : > { %v1966_v32 = vsel %vm1902_vm0, %v1870_v46, %v1934_v37  ;;  %2210 = vmatmul.msk.f32.gmra.mxu1 %vm1056_vm15, %v1603_v35  ;;  %2245 = vmatmul.msk.f32.gmra.mxu2 %vm1056_vm15, %v1603_v35 }
 0x1bc   : > { %v2030_v27 = vadd.f32 %v1998_v41, %v1966_v32  ;;  %v1743_v9 = vpop.f32.mrf.mxu3  ;;  %v829_v16 = vpop.permute.xlu1 %828 }
 0x1bd   : > { %v1835_v38 = vadd.f32 %v1743_v9, %v1497_v43  ;;  %v1014_v45 = vsel %vm990_vm9, %v2731_v13, %v829_v16  ;;  %v698_v9 = vsel %vm604_vm5, 0.0, %v644_v11 }
 0x1be   : > { %2062 = vst.msk [vmem:[%s2922_s17 + $0x8] sm:$0xff] %vm262_vm1, %v2030_v27  ;;  %v1046_v54 = vsel %vm262_vm1, %v1014_v45, %v941_v47  ;;  %v1502_v56 = vpop.f32.mrf.mxu2 }
 0x1bf   : > { %v1871_v10 = vadd.f32 %v2908_v62, %v1835_v38  ;;  %1080 = vst.msk [vmem:[#allocation2 + $0xc8] sm:$0xff] %vm1056_vm15, %v1046_v54  ;;  %v939_v25 = vpop.permute.xlu0 %938  ;;  %v1287_v40 = vpop.f32.mrf.mxu1 }
 0x1c0   : > { %v1045_v13 = vsel %vm262_vm1, %v1013_v57, %v939_v25  ;;  %v1500_v55 = vadd.f32 %v1499_v29, %v1287_v40 }
 0x1c1   : > { %vm1903_vm2 = vcmp.gt.f32.partialorder %v1871_v10, 0.0  ;;  %v1935_v15 = vmul.f32 0.1, %v1871_v10  ;;  %1079 = vst.msk [vmem:[#allocation2 + $0xc0] sm:$0xff] %vm1056_vm15, %v1045_v13 }
 0x1c2   : > { %2278 = vmatmul.msk.f32.gmra.mxu3 %vm1056_vm15, %v1606_v1 }
 0x1c3   : > { %v1967_v44 = vsel %vm1903_vm2, %v1871_v10, %v1935_v15  ;;  %2211 = vmatmul.msk.f32.gmra.mxu1 %vm1056_vm15, %v1604_v14  ;;  %2246 = vmatmul.msk.f32.gmra.mxu2 %vm1056_vm15, %v1604_v14  ;;  %v1016_v14 = vsel %vm990_vm9, %v2759_v53, %v833_v8 }
 0x1c4   : > { %v2031_v49 = vadd.f32 %v1999_v52, %v1967_v44  ;;  %v1746_v58 = vpop.f32.mrf.mxu3 }
 0x1c5   : > { %v1836_v61 = vadd.f32 %v1746_v58, %v1500_v55 }
 0x1c6   : > { %2063 = vst.msk [vmem:[%s2922_s17 + $0x10] sm:$0xff] %vm262_vm1, %v2031_v49  ;;  %v1505_v35 = vpop.f32.mrf.mxu2  ;;  %v1608_v34 = vld [vmem:[#allocation2 + $0xc8] sm:$0xff] }
 0x1c7   : > { %v1872_v6 = vadd.f32 %v2908_v62, %v1836_v61  ;;  %v831_v51 = vpop.permute.xlu0 %830  ;;  %v947_v38 = vpop.permute.xlu2 %946 }
 0x1c8   : > { %v1290_v26 = vpop.f32.mrf.mxu1  ;;  %v1607_v2 = vld [vmem:[#allocation2 + $0xc0] sm:$0xff]  ;;  %v1015_v19 = vsel %vm990_vm9, %v697_v59, %v831_v51 }
 0x1c9   : > { %vm1904_vm3 = vcmp.gt.f32.partialorder %v1872_v6, 0.0  ;;  %v1936_v3 = vmul.f32 0.1, %v1872_v6  ;;  %v1503_v63 = vadd.f32 %v1502_v56, %v1290_v26  ;;  %v2002_v56 = vld [vmem:[%s2369_s25 + $0x28] sm:$0xff] }
 0x1ca   : > { %2279 = vmatmul.msk.f32.gmra.mxu3 %vm1056_vm15, %v1607_v2 }
 0x1cb   : > { %v1968_v7 = vsel %vm1904_vm3, %v1872_v6, %v1936_v3  ;;  %2212 = vmatmul.msk.f32.gmra.mxu1 %vm1056_vm15, %v1605_v12  ;;  %2247 = vmatmul.msk.f32.gmra.mxu2 %vm1056_vm15, %v1605_v12 }
 0x1cc   : > { %v2032_v17 = vadd.f32 %v2000_v4, %v1968_v7 }
 0x1cd   : > { %v1749_v36 = vpop.f32.mrf.mxu3 }
 0x1ce   : > { %2064 = vst.msk [vmem:[%s2922_s17 + $0x18] sm:$0xff] %vm262_vm1, %v2032_v17  ;;  %v1837_v22 = vadd.f32 %v1749_v36, %v1503_v63  ;;  %v1508_v28 = vpop.f32.mrf.mxu2  ;;  %v2004_v36 = vld [vmem:[%s2369_s25 + $0x38] sm:$0xff] }
 0x1cf   : > { %v945_v42 = vpop.permute.xlu0 %944  ;;  %v943_v24 = vpop.permute.xlu1 %942 }
 0x1d0   : > { %v1873_v21 = vadd.f32 %v2908_v62, %v1837_v22  ;;  %v1048_v23 = vsel %vm262_vm1, %v1016_v14, %v945_v42  ;;  %v1293_v29 = vpop.f32.mrf.mxu1  ;;  %v1047_v46 = vsel %vm262_vm1, %v1015_v19, %v943_v24  ;;  %v839_v6 = vpop.permute.xlu2 %838 }
 0x1d1   : > { %1082 = vst.msk [vmem:[#allocation2 + $0xd8] sm:$0xff] %vm1056_vm15, %v1048_v23  ;;  %v1506_v37 = vadd.f32 %v1505_v35, %v1293_v29  ;;  %v2003_v35 = vld [vmem:[%s2369_s25 + $0x30] sm:$0xff]  ;;  %v699_v23 = vsel %vm604_vm5, 0.0, %v647_v48 }
 0x1d2   : > { %vm1905_vm6 = vcmp.gt.f32.partialorder %v1873_v21, 0.0  ;;  %v1937_v53 = vmul.f32 0.1, %v1873_v21  ;;  %1081 = vst.msk [vmem:[#allocation2 + $0xd0] sm:$0xff] %vm1056_vm15, %v1047_v46  ;;  %2280 = vmatmul.msk.f32.gmra.mxu3 %vm1056_vm15, %v1608_v34 }
 0x1d3   : > { %2213 = vmatmul.msk.f32.gmra.mxu1 %vm1056_vm15, %v1606_v1  ;;  %2248 = vmatmul.msk.f32.gmra.mxu2 %vm1056_vm15, %v1606_v1 }
 0x1d4   : > { %v1969_v39 = vsel %vm1905_vm6, %v1873_v21, %v1937_v53 }
 0x1d5   : > { %v2033_v41 = vadd.f32 %v2001_v31, %v1969_v39  ;;  %v1752_v12 = vpop.f32.mrf.mxu3 }
 0x1d6   : > { %v1838_v32 = vadd.f32 %v1752_v12, %v1506_v37  ;;  %v1511_v43 = vpop.f32.mrf.mxu2  ;;  %v2005_v37 = vld [vmem:[%s2369_s25 + $0x40] sm:$0xff] }
 0x1d7   : > { %2065 = vst.msk [vmem:[%s2922_s17 + $0x20] sm:$0xff] %vm262_vm1, %v2033_v41  ;;  %v835_v16 = vpop.permute.xlu1 %834 }
 0x1d8   : > { %v1874_v27 = vadd.f32 %v2908_v62, %v1838_v32  ;;  %v1296_v47 = vpop.f32.mrf.mxu1  ;;  %v1017_v45 = vsel %vm990_vm9, %v698_v9, %v835_v16  ;;  %v1610_v58 = vld [vmem:[#allocation2 + $0xd8] sm:$0xff]  ;;  %v953_v59 = vpop.permute.xlu2 %952 }
 0x1d9   : > { %v1609_v50 = vld [vmem:[#allocation2 + $0xd0] sm:$0xff]  ;;  %v1049_v57 = vsel %vm262_vm1, %v1017_v45, %v947_v38  ;;  %v1509_v11 = vadd.f32 %v1508_v28, %v1296_v47 }
 0x1da   : > { %vm1906_vm7 = vcmp.gt.f32.partialorder %v1874_v27, 0.0  ;;  %v1938_v54 = vmul.f32 0.1, %v1874_v27  ;;  %2281 = vmatmul.msk.f32.gmra.mxu3 %vm1056_vm15, %v1609_v50  ;;  %1083 = vst.msk [vmem:[#allocation2 + $0xe0] sm:$0xff] %vm1056_vm15, %v1049_v57 }
 0x1db   : > { %2214 = vmatmul.msk.f32.gmra.mxu1 %vm1056_vm15, %v1607_v2  ;;  %2249 = vmatmul.msk.f32.gmra.mxu2 %vm1056_vm15, %v1607_v2 }
 0x1dc   : > { %v1970_v60 = vsel %vm1906_vm7, %v1874_v27, %v1938_v54  ;;  %v837_v25 = vpop.permute.xlu0 %836  ;;  %v2006_v54 = vld [vmem:[%s2369_s25 + $0x48] sm:$0xff] }
 0x1dd   : > { %v2034_v10 = vadd.f32 %v2002_v56, %v1970_v60  ;;  %v1755_v40 = vpop.f32.mrf.mxu3  ;;  %v1018_v52 = vsel %vm990_vm9, %v2793_v18, %v837_v25  ;;  %v700_v25 = vsel %vm604_vm5, 0.0, %v650_v5 }
 0x1de   : > { %v1839_v13 = vadd.f32 %v1755_v40, %v1509_v11  ;;  %v1514_v15 = vpop.f32.mrf.mxu2 }
 0x1df   : > { %2066 = vst.msk [vmem:[%s2922_s17 + $0x28] sm:$0xff] %vm262_vm1, %v2034_v10  ;;  %v949_v44 = vpop.permute.xlu1 %948 }
 0x1e0   : > { %v1875_v1 = vadd.f32 %v2908_v62, %v1839_v13  ;;  %v1299_v55 = vpop.f32.mrf.mxu1  ;;  %v1050_v49 = vsel %vm262_vm1, %v1018_v52, %v949_v44 }
 0x1e1   : > { %1084 = vst.msk [vmem:[#allocation2 + $0xe8] sm:$0xff] %vm1056_vm15, %v1050_v49  ;;  %v1512_v51 = vadd.f32 %v1511_v43, %v1299_v55  ;;  %v1611_v17 = vld [vmem:[#allocation2 + $0xe0] sm:$0xff] }
 0x1e2   : > { %vm1907_vm8 = vcmp.gt.f32.partialorder %v1875_v1, 0.0  ;;  %v1939_v61 = vmul.f32 0.1, %v1875_v1  ;;  %2282 = vmatmul.msk.f32.gmra.mxu3 %vm1056_vm15, %v1610_v58 }
 0x1e3   : > { %2215 = vmatmul.msk.f32.gmra.mxu1 %vm1056_vm15, %v1608_v34  ;;  %2250 = vmatmul.msk.f32.gmra.mxu2 %vm1056_vm15, %v1608_v34  ;;  %v1019_v34 = vsel %vm990_vm9, %v699_v23, %v839_v6 }
 0x1e4   : > { %v1971_v18 = vsel %vm1907_vm8, %v1875_v1, %v1939_v61  ;;  %v845_v56 = vpop.permute.xlu2 %844 }
 0x1e5   : > { %v2035_v26 = vadd.f32 %v2003_v35, %v1971_v18  ;;  %v1758_v2 = vpop.f32.mrf.mxu3 }
 0x1e6   : > { %v1840_v3 = vadd.f32 %v1758_v2, %v1512_v51  ;;  %v1517_v4 = vpop.f32.mrf.mxu2 }
 0x1e7   : > { %2067 = vst.msk [vmem:[%s2922_s17 + $0x30] sm:$0xff] %vm262_vm1, %v2035_v26 }
 0x1e8   : > { %v1876_v7 = vadd.f32 %v2908_v62, %v1840_v3  ;;  %v1302_v8 = vpop.f32.mrf.mxu1  ;;  %v1612_v48 = vld [vmem:[#allocation2 + $0xe8] sm:$0xff] }
 0x1e9   : > { %v1515_v28 = vadd.f32 %v1514_v15, %v1302_v8  ;;  %v1022_v15 = vsel %vm990_vm9, %v2863_v33, %v845_v56  ;;  %v2007_v33 = vld [vmem:[%s2369_s25 + $0x50] sm:$0xff] }
 0x1ea   : > { %vm1908_vm10 = vcmp.gt.f32.partialorder %v1876_v7, 0.0  ;;  %v1940_v63 = vmul.f32 0.1, %v1876_v7  ;;  %2283 = vmatmul.msk.f32.gmra.mxu3 %vm1056_vm15, %v1611_v17 }
 0x1eb   : > { %2216 = vmatmul.msk.f32.gmra.mxu1 %vm1056_vm15, %v1609_v50  ;;  %2251 = vmatmul.msk.f32.gmra.mxu2 %vm1056_vm15, %v1609_v50 }
 0x1ec   : > { %v1972_v22 = vsel %vm1908_vm10, %v1876_v7, %v1940_v63  ;;  %v841_v14 = vpop.permute.xlu1 %840 }
 0x1ed   : > { %v2036_v42 = vadd.f32 %v2004_v36, %v1972_v22  ;;  %v1761_v19 = vpop.f32.mrf.mxu3  ;;  %v1020_v21 = vsel %vm990_vm9, %v2833_v0, %v841_v14 }
 0x1ee   : > { %v1841_v24 = vadd.f32 %v1761_v19, %v1515_v28  ;;  %v1052_v29 = vsel %vm262_vm1, %v1020_v21, %v953_v59  ;;  %v1520_v46 = vpop.f32.mrf.mxu2 }
 0x1ef   : > { %2068 = vst.msk [vmem:[%s2922_s17 + $0x38] sm:$0xff] %vm262_vm1, %v2036_v42  ;;  %v951_v53 = vpop.permute.xlu0 %950 }
 0x1f0   : > { %v1877_v31 = vadd.f32 %v2908_v62, %v1841_v24  ;;  %1086 = vst.msk [vmem:[#allocation2 + $0xf8] sm:$0xff] %vm1056_vm15, %v1052_v29  ;;  %v1051_v0 = vsel %vm262_vm1, %v1019_v34, %v951_v53  ;;  %v1305_v20 = vpop.f32.mrf.mxu1  ;;  %v2009_v24 = vld [vmem:[%s2369_s25 + $0x60] sm:$0xff] }
 0x1f1   : > { %1085 = vst.msk [vmem:[#allocation2 + $0xf0] sm:$0xff] %vm1056_vm15, %v1051_v0  ;;  %v1518_v12 = vadd.f32 %v1517_v4, %v1305_v20  ;;  %v1617_v20 = vld [vmem:[#allocation2 + $0x110] sm:$0xff] }
 0x1f2   : > { %vm1909_vm11 = vcmp.gt.f32.partialorder %v1877_v31, 0.0  ;;  %v1941_v39 = vmul.f32 0.1, %v1877_v31  ;;  %2284 = vmatmul.msk.f32.gmra.mxu3 %vm1056_vm15, %v1612_v48 }
 0x1f3   : > { %2217 = vmatmul.msk.f32.gmra.mxu1 %vm1056_vm15, %v1610_v58  ;;  %2252 = vmatmul.msk.f32.gmra.mxu2 %vm1056_vm15, %v1610_v58 }
 0x1f4   : > { %v1973_v41 = vsel %vm1909_vm11, %v1877_v31, %v1941_v39 }
 0x1f5   : > { %v2037_v32 = vadd.f32 %v2005_v37, %v1973_v41  ;;  %v1764_v43 = vpop.f32.mrf.mxu3  ;;  %v2010_v41 = vld [vmem:[%s2369_s25 + $0x68] sm:$0xff] }
 0x1f6   : > { %v1842_v27 = vadd.f32 %v1764_v43, %v1518_v12  ;;  %v1523_v9 = vpop.f32.mrf.mxu2 }
 0x1f7   : > { %2069 = vst.msk [vmem:[%s2922_s17 + $0x40] sm:$0xff] %vm262_vm1, %v2037_v32  ;;  %v843_v16 = vpop.permute.xlu0 %842  ;;  %v1614_v5 = vld [vmem:[#allocation2 + $0xf8] sm:$0xff] }
 0x1f8   : > { %v1878_v47 = vadd.f32 %v2908_v62, %v1842_v27  ;;  %v1308_v38 = vpop.f32.mrf.mxu1  ;;  %v1613_v45 = vld [vmem:[#allocation2 + $0xf0] sm:$0xff]  ;;  %v1021_v52 = vsel %vm990_vm9, %v700_v25, %v843_v16 }
 0x1f9   : > { %v1521_v60 = vadd.f32 %v1520_v46, %v1308_v38 }
 0x1fa   : > { %vm1910_vm12 = vcmp.gt.f32.partialorder %v1878_v47, 0.0  ;;  %v1942_v50 = vmul.f32 0.1, %v1878_v47  ;;  %2285 = vmatmul.msk.f32.gmra.mxu3 %vm1056_vm15, %v1613_v45 }
 0x1fb   : > { %2218 = vmatmul.msk.f32.gmra.mxu1 %vm1056_vm15, %v1611_v17  ;;  %2253 = vmatmul.msk.f32.gmra.mxu2 %vm1056_vm15, %v1611_v17  ;;  %v2008_v17 = vld [vmem:[%s2369_s25 + $0x58] sm:$0xff] }
 0x1fc   : > { %v1974_v57 = vsel %vm1910_vm12, %v1878_v47, %v1942_v50  ;;  %v1618_v47 = vld [vmem:[#allocation2 + $0x118] sm:$0xff] }
 0x1fd   : > { %v2038_v11 = vadd.f32 %v2006_v54, %v1974_v57  ;;  %v1767_v10 = vpop.f32.mrf.mxu3  ;;  %v2011_v54 = vld [vmem:[%s2369_s25 + $0x70] sm:$0xff] }
 0x1fe   : > { %v1843_v40 = vadd.f32 %v1767_v10, %v1521_v60  ;;  %v1526_v13 = vpop.f32.mrf.mxu2 }
 0x1ff   : > { %2070 = vst.msk [vmem:[%s2922_s17 + $0x48] sm:$0xff] %vm262_vm1, %v2038_v11  ;;  %v957_v1 = vpop.permute.xlu0 %956  ;;  %v955_v44 = vpop.permute.xlu1 %954 }
 0x200   : > { %v1879_v55 = vadd.f32 %v2908_v62, %v1843_v40  ;;  %v1054_v49 = vsel %vm262_vm1, %v1022_v15, %v957_v1  ;;  %v1053_v30 = vsel %vm262_vm1, %v1021_v52, %v955_v44  ;;  %v1311_v58 = vpop.f32.mrf.mxu1  ;;  %v2012_v52 = vld [vmem:[%s2369_s25 + $0x78] sm:$0xff] }
 0x201   : > { %1088 = vst.msk [vmem:[#allocation2 + $0x108] sm:$0xff] %vm1056_vm15, %v1054_v49  ;;  %v1524_v6 = vadd.f32 %v1523_v9, %v1311_v58 }
 0x202   : > { %vm1911_vm5 = vcmp.gt.f32.partialorder %v1879_v55, 0.0  ;;  %v1943_v61 = vmul.f32 0.1, %v1879_v55  ;;  %1087 = vst.msk [vmem:[#allocation2 + $0x100] sm:$0xff] %vm1056_vm15, %v1053_v30  ;;  %2286 = vmatmul.msk.f32.gmra.mxu3 %vm1056_vm15, %v1614_v5 }
 0x203   : > { %2219 = vmatmul.msk.f32.gmra.mxu1 %vm1056_vm15, %v1612_v48  ;;  %2254 = vmatmul.msk.f32.gmra.mxu2 %vm1056_vm15, %v1612_v48 }
 0x204   : > { %v1975_v35 = vsel %vm1911_vm5, %v1879_v55, %v1943_v61 }
 0x205   : > { %v2039_v18 = vadd.f32 %v2007_v33, %v1975_v35  ;;  %v1770_v51 = vpop.f32.mrf.mxu3  ;;  %v2013_v35 = vld [vmem:[%s2369_s25 + $0x80] sm:$0xff] }
 0x206   : > { %v1844_v26 = vadd.f32 %v1770_v51, %v1524_v6  ;;  %v1529_v2 = vpop.f32.mrf.mxu2 }
 0x207   : > { %2071 = vst.msk [vmem:[%s2922_s17 + $0x50] sm:$0xff] %vm262_vm1, %v2039_v18 }
 0x208   : > { %v1880_v3 = vadd.f32 %v2908_v62, %v1844_v26  ;;  %v1314_v4 = vpop.f32.mrf.mxu1  ;;  %v1616_v21 = vld [vmem:[#allocation2 + $0x108] sm:$0xff] }
 0x209   : > { %v1615_v7 = vld [vmem:[#allocation2 + $0x100] sm:$0xff]  ;;  %v1527_v36 = vadd.f32 %v1526_v13, %v1314_v4 }
 0x20a   : > { %vm1912_vm9 = vcmp.gt.f32.partialorder %v1880_v3, 0.0  ;;  %v1944_v8 = vmul.f32 0.1, %v1880_v3  ;;  %2287 = vmatmul.msk.f32.gmra.mxu3 %vm1056_vm15, %v1615_v7 }
 0x20b   : > { %2220 = vmatmul.msk.f32.gmra.mxu1 %vm1056_vm15, %v1613_v45  ;;  %2255 = vmatmul.msk.f32.gmra.mxu2 %vm1056_vm15, %v1613_v45 }
 0x20c   : > { %v1976_v63 = vsel %vm1912_vm9, %v1880_v3, %v1944_v8 }
 0x20d   : > { %v2040_v22 = vadd.f32 %v2008_v17, %v1976_v63  ;;  %v1773_v28 = vpop.f32.mrf.mxu3  ;;  %v2014_v17 = vld [vmem:[%s2369_s25 + $0x88] sm:$0xff] }
 0x20e   : > { %v1845_v14 = vadd.f32 %v1773_v28, %v1527_v36  ;;  %v1532_v59 = vpop.f32.mrf.mxu2 }
 0x20f   : > { %2072 = vst.msk [vmem:[%s2922_s17 + $0x58] sm:$0xff] %vm262_vm1, %v2040_v22 }
 0x210   : > { %v1881_v42 = vadd.f32 %v2908_v62, %v1845_v14  ;;  %v1317_v19 = vpop.f32.mrf.mxu1 }
 0x211   : > { %v1530_v46 = vadd.f32 %v1529_v2, %v1317_v19 }
 0x212   : > { %vm1913_vm13 = vcmp.gt.f32.partialorder %v1881_v42, 0.0  ;;  %v1945_v23 = vmul.f32 0.1, %v1881_v42  ;;  %2288 = vmatmul.msk.f32.gmra.mxu3 %vm1056_vm15, %v1616_v21 }
 0x213   : > { %2221 = vmatmul.msk.f32.gmra.mxu1 %vm1056_vm15, %v1614_v5  ;;  %2256 = vmatmul.msk.f32.gmra.mxu2 %vm1056_vm15, %v1614_v5 }
 0x214   : > { %v1977_v29 = vsel %vm1913_vm13, %v1881_v42, %v1945_v23  ;;  %v2015_v23 = vld [vmem:[%s2369_s25 + $0x90] sm:$0xff] }
 0x215   : > { %v2041_v34 = vadd.f32 %v2009_v24, %v1977_v29  ;;  %v1776_v53 = vpop.f32.mrf.mxu3 }
 0x216   : > { %v1846_v31 = vadd.f32 %v1776_v53, %v1530_v46  ;;  %v1535_v0 = vpop.f32.mrf.mxu2 }
 0x217   : > { %2073 = vst.msk [vmem:[%s2922_s17 + $0x60] sm:$0xff] %vm262_vm1, %v2041_v34 }
 0x218   : > { %v1882_v48 = vadd.f32 %v2908_v62, %v1846_v31  ;;  %v1320_v39 = vpop.f32.mrf.mxu1 }
 0x219   : > { %v1533_v32 = vadd.f32 %v1532_v59, %v1320_v39  ;;  %v2016_v39 = vld [vmem:[%s2369_s25 + $0x98] sm:$0xff] }
 0x21a   : > { %vm1914_vm14 = vcmp.gt.f32.partialorder %v1882_v48, 0.0  ;;  %v1946_v37 = vmul.f32 0.1, %v1882_v48  ;;  %2289 = vmatmul.msk.f32.gmra.mxu3 %vm1056_vm15, %v1617_v20 }
 0x21b   : > { %2222 = vmatmul.msk.f32.gmra.mxu1 %vm1056_vm15, %v1615_v7 }
 0x21c   : > { %v1978_v12 = vsel %vm1914_vm14, %v1882_v48, %v1946_v37 }
 0x21d   : > { %v2042_v43 = vadd.f32 %v2010_v41, %v1978_v12  ;;  %v1779_v27 = vpop.f32.mrf.mxu3 }
 0x21e   : > { %v1847_v9 = vadd.f32 %v1779_v27, %v1533_v32  ;;  %v1538_v16 = vpop.f32.mrf.mxu2 }
 0x21f   : > { %2074 = vst.msk [vmem:[%s2922_s17 + $0x68] sm:$0xff] %vm262_vm1, %v2042_v43 }
 0x220   : > { %v1883_v38 = vadd.f32 %v2908_v62, %v1847_v9  ;;  %v1323_v45 = vpop.f32.mrf.mxu1 }
 0x221   : > { %v1536_v57 = vadd.f32 %v1535_v0, %v1323_v45 }
 0x222   : > { %vm1915_vm4 = vcmp.gt.f32.partialorder %v1883_v38, 0.0  ;;  %v1947_v50 = vmul.f32 0.1, %v1883_v38  ;;  %2290 = vmatmul.msk.f32.gmra.mxu3 %vm1056_vm15, %v1618_v47 }
 0x223   : > { %2223 = vmatmul.msk.f32.gmra.mxu1 %vm1056_vm15, %v1616_v21 }
 0x224   : > { %v1979_v56 = vsel %vm1915_vm4, %v1883_v38, %v1947_v50  ;;  %v2017_v38 = vld [vmem:[%s2369_s25 + $0xa0] sm:$0xff] }
 0x225   : > { %v2043_v60 = vadd.f32 %v2011_v54, %v1979_v56  ;;  %v1782_v11 = vpop.f32.mrf.mxu3 }
 0x226   : > { %v1848_v10 = vadd.f32 %v1782_v11, %v1536_v57  ;;  %v1541_v25 = vpop.f32.mrf.mxu2 }
 0x227   : > { %2075 = vst.msk [vmem:[%s2922_s17 + $0x70] sm:$0xff] %vm262_vm1, %v2043_v60 }
 0x228   : > { %v1884_v40 = vadd.f32 %v2908_v62, %v1848_v10  ;;  %v1326_v13 = vpop.f32.mrf.mxu1 }
 0x229   : > { %v1539_v44 = vadd.f32 %v1538_v16, %v1326_v13 }
 0x22a   : > { %vm1916_vm0 = vcmp.gt.f32.partialorder %v1884_v40, 0.0  ;;  %v1948_v15 = vmul.f32 0.1, %v1884_v40 }
 0x22c   : > { %v1980_v1 = vsel %vm1916_vm0, %v1884_v40, %v1948_v15  ;;  %v2018_v40 = vld [vmem:[%s2369_s25 + $0xa8] sm:$0xff] }
 0x22d   : > { %v2044_v55 = vadd.f32 %v2012_v52, %v1980_v1  ;;  %v1785_v49 = vpop.f32.mrf.mxu3 }
 0x22e   : > { %v1849_v30 = vadd.f32 %v1785_v49, %v1539_v44  ;;  %v1544_v58 = vpop.f32.mrf.mxu2 }
 0x22f   : > { %2076 = vst.msk [vmem:[%s2922_s17 + $0x78] sm:$0xff] %vm262_vm1, %v2044_v55 }
 0x230   : > { %v1885_v5 = vadd.f32 %v2908_v62, %v1849_v30  ;;  %v1329_v61 = vpop.f32.mrf.mxu1 }
 0x231   : > { %v1542_v18 = vadd.f32 %v1541_v25, %v1329_v61 }
 0x232   : > { %vm1917_vm15 = vcmp.gt.f32.partialorder %v1885_v5, 0.0  ;;  %v1949_v33 = vmul.f32 0.1, %v1885_v5 }
 0x234   : > { %v1981_v6 = vsel %vm1917_vm15, %v1885_v5, %v1949_v33  ;;  %v2019_v5 = vld [vmem:[%s2369_s25 + $0xb0] sm:$0xff] }
 0x235   : > { %v2045_v51 = vadd.f32 %v2013_v35, %v1981_v6  ;;  %v1788_v26 = vpop.f32.mrf.mxu3 }
 0x236   : > { %v1850_v2 = vadd.f32 %v1788_v26, %v1542_v18  ;;  %v1547_v3 = vpop.f32.mrf.mxu2 }
 0x237   : > { %2077 = vst.msk [vmem:[%s2922_s17 + $0x80] sm:$0xff] %vm262_vm1, %v2045_v51 }
 0x238   : > { %v1886_v4 = vadd.f32 %v2908_v62, %v1850_v2  ;;  %v1332_v7 = vpop.f32.mrf.mxu1 }
 0x239   : > { %v1545_v36 = vadd.f32 %v1544_v58, %v1332_v7 }
 0x23a   : > { %vm1918_vm2 = vcmp.gt.f32.partialorder %v1886_v4, 0.0  ;;  %v1950_v8 = vmul.f32 0.1, %v1886_v4 }
 0x23c   : > { %v1982_v63 = vsel %vm1918_vm2, %v1886_v4, %v1950_v8  ;;  %v2020_v4 = vld [vmem:[%s2369_s25 + $0xb8] sm:$0xff] }
 0x23d   : > { %v2046_v22 = vadd.f32 %v2014_v17, %v1982_v63  ;;  %v1791_v28 = vpop.f32.mrf.mxu3 }
 0x23e   : > { %v1851_v14 = vadd.f32 %v1791_v28, %v1545_v36  ;;  %v1550_v59 = vpop.f32.mrf.mxu2 }
 0x23f   : > { %2078 = vst.msk [vmem:[%s2922_s17 + $0x88] sm:$0xff] %vm262_vm1, %v2046_v22 }
 0x240   : > { %v1887_v42 = vadd.f32 %v2908_v62, %v1851_v14  ;;  %v1335_v19 = vpop.f32.mrf.mxu1 }
 0x241   : > { %v1548_v29 = vadd.f32 %v1547_v3, %v1335_v19 }
 0x242   : > { %vm1919_vm3 = vcmp.gt.f32.partialorder %v1887_v42, 0.0  ;;  %v1951_v21 = vmul.f32 0.1, %v1887_v42 }
 0x244   : > { %v1983_v24 = vsel %vm1919_vm3, %v1887_v42, %v1951_v21  ;;  %v2021_v42 = vld [vmem:[%s2369_s25 + $0xc0] sm:$0xff] }
 0x245   : > { %v2047_v46 = vadd.f32 %v2015_v23, %v1983_v24  ;;  %v1794_v34 = vpop.f32.mrf.mxu3 }
 0x246   : > { %v1852_v53 = vadd.f32 %v1794_v34, %v1548_v29  ;;  %v1553_v31 = vpop.f32.mrf.mxu2 }
 0x247   : > { %2079 = vst.msk [vmem:[%s2922_s17 + $0x90] sm:$0xff] %vm262_vm1, %v2047_v46 }
 0x248   : > { %v1888_v0 = vadd.f32 %v2908_v62, %v1852_v53  ;;  %v1338_v20 = vpop.f32.mrf.mxu1 }
 0x249   : > { %v1551_v41 = vadd.f32 %v1550_v59, %v1338_v20 }
 0x24a   : > { %vm1920_vm6 = vcmp.gt.f32.partialorder %v1888_v0, 0.0  ;;  %v1952_v48 = vmul.f32 0.1, %v1888_v0 }
 0x24c   : > { %v1984_v37 = vsel %vm1920_vm6, %v1888_v0, %v1952_v48 }
 0x24d   : > { %v2048_v12 = vadd.f32 %v2016_v39, %v1984_v37  ;;  %v1797_v32 = vpop.f32.mrf.mxu3 }
 0x24e   : > { %v1853_v43 = vadd.f32 %v1797_v32, %v1551_v41  ;;  %v1556_v27 = vpop.f32.mrf.mxu2 }
 0x24f   : > { %2080 = vst.msk [vmem:[%s2922_s17 + $0x98] sm:$0xff] %vm262_vm1, %v2048_v12 }
 0x250   : > { %v1889_v9 = vadd.f32 %v2908_v62, %v1853_v43  ;;  %v1341_v16 = vpop.f32.mrf.mxu1 }
 0x251   : > { %v1554_v50 = vadd.f32 %v1553_v31, %v1341_v16  ;;  %v2022_v31 = vld [vmem:[%s2369_s25 + $0xc8] sm:$0xff] }
 0x252   : > { %vm1921_vm7 = vcmp.gt.f32.partialorder %v1889_v9, 0.0  ;;  %v1953_v47 = vmul.f32 0.1, %v1889_v9 }
 0x254   : > { %v1985_v45 = vsel %vm1921_vm7, %v1889_v9, %v1953_v47 }
 0x255   : > { %v2049_v54 = vadd.f32 %v2017_v38, %v1985_v45  ;;  %v1800_v56 = vpop.f32.mrf.mxu3 }
 0x256   : > { %v1854_v57 = vadd.f32 %v1800_v56, %v1554_v50  ;;  %v1559_v60 = vpop.f32.mrf.mxu2 }
 0x257   : > { %2081 = vst.msk [vmem:[%s2922_s17 + $0xa0] sm:$0xff] %vm262_vm1, %v2049_v54 }
 0x258   : > { %v1890_v11 = vadd.f32 %v2908_v62, %v1854_v57  ;;  %v1344_v10 = vpop.f32.mrf.mxu1 }
 0x259   : > { %v1557_v15 = vadd.f32 %v1556_v27, %v1344_v10  ;;  %v2023_v27 = vld [vmem:[%s2369_s25 + $0xd0] sm:$0xff] }
 0x25a   : > { %vm1922_vm8 = vcmp.gt.f32.partialorder %v1890_v11, 0.0  ;;  %v1954_v25 = vmul.f32 0.1, %v1890_v11 }
 0x25c   : > { %v1986_v13 = vsel %vm1922_vm8, %v1890_v11, %v1954_v25 }
 0x25d   : > { %v2050_v52 = vadd.f32 %v2018_v40, %v1986_v13  ;;  %v1803_v1 = vpop.f32.mrf.mxu3 }
 0x25e   : > { %v1855_v44 = vadd.f32 %v1803_v1, %v1557_v15  ;;  %v1562_v55 = vpop.f32.mrf.mxu2 }
 0x25f   : > { %2082 = vst.msk [vmem:[%s2922_s17 + $0xa8] sm:$0xff] %vm262_vm1, %v2050_v52 }
 0x260   : > { %v1891_v49 = vadd.f32 %v2908_v62, %v1855_v44  ;;  %v1347_v30 = vpop.f32.mrf.mxu1 }
 0x261   : > { %v1560_v33 = vadd.f32 %v1559_v60, %v1347_v30  ;;  %v2024_v60 = vld [vmem:[%s2369_s25 + $0xd8] sm:$0xff] }
 0x262   : > { %vm1923_vm10 = vcmp.gt.f32.partialorder %v1891_v49, 0.0  ;;  %v1955_v58 = vmul.f32 0.1, %v1891_v49 }
 0x264   : > { %v1987_v61 = vsel %vm1923_vm10, %v1891_v49, %v1955_v58 }
 0x265   : > { %v2051_v35 = vadd.f32 %v2019_v5, %v1987_v61  ;;  %v1806_v6 = vpop.f32.mrf.mxu3 }
 0x266   : > { %v1856_v18 = vadd.f32 %v1806_v6, %v1560_v33  ;;  %v1565_v51 = vpop.f32.mrf.mxu2 }
 0x267   : > { %2083 = vst.msk [vmem:[%s2922_s17 + $0xb0] sm:$0xff] %vm262_vm1, %v2051_v35 }
 0x268   : > { %v1892_v26 = vadd.f32 %v2908_v62, %v1856_v18  ;;  %v1350_v2 = vpop.f32.mrf.mxu1 }
 0x269   : > { %v1563_v8 = vadd.f32 %v1562_v55, %v1350_v2  ;;  %v2025_v55 = vld [vmem:[%s2369_s25 + $0xe0] sm:$0xff] }
 0x26a   : > { %vm1924_vm11 = vcmp.gt.f32.partialorder %v1892_v26, 0.0  ;;  %v1956_v3 = vmul.f32 0.1, %v1892_v26 }
 0x26c   : > { %v1988_v7 = vsel %vm1924_vm11, %v1892_v26, %v1956_v3 }
 0x26d   : > { %v2052_v17 = vadd.f32 %v2020_v4, %v1988_v7  ;;  %v1809_v63 = vpop.f32.mrf.mxu3 }
 0x26e   : > { %v1857_v36 = vadd.f32 %v1809_v63, %v1563_v8  ;;  %v1568_v14 = vpop.f32.mrf.mxu2 }
 0x26f   : > { %2084 = vst.msk [vmem:[%s2922_s17 + $0xb8] sm:$0xff] %vm262_vm1, %v2052_v17 }
 0x270   : > { %v1893_v22 = vadd.f32 %v2908_v62, %v1857_v36  ;;  %v1353_v28 = vpop.f32.mrf.mxu1  ;;  %v2027_v36 = vld [vmem:[%s2369_s25 + $0xf0] sm:$0xff] }
 0x271   : > { %v1566_v21 = vadd.f32 %v1565_v51, %v1353_v28  ;;  %v2026_v51 = vld [vmem:[%s2369_s25 + $0xe8] sm:$0xff] }
 0x272   : > { %vm1925_vm12 = vcmp.gt.f32.partialorder %v1893_v22, 0.0  ;;  %v1957_v59 = vmul.f32 0.1, %v1893_v22 }
 0x274   : > { %v1989_v19 = vsel %vm1925_vm12, %v1893_v22, %v1957_v59 }
 0x275   : > { %v2053_v23 = vadd.f32 %v2021_v42, %v1989_v19  ;;  %v1812_v24 = vpop.f32.mrf.mxu3 }
 0x276   : > { %v1858_v29 = vadd.f32 %v1812_v24, %v1566_v21  ;;  %v1571_v0 = vpop.f32.mrf.mxu2  ;;  %v2028_v24 = vld [vmem:[%s2369_s25 + $0xf8] sm:$0xff] }
 0x277   : > { %2085 = vst.msk [vmem:[%s2922_s17 + $0xc0] sm:$0xff] %vm262_vm1, %v2053_v23 }
 0x278   : > { %v1894_v46 = vadd.f32 %v2908_v62, %v1858_v29  ;;  %v1356_v34 = vpop.f32.mrf.mxu1 }
 0x279   : > { %v1569_v48 = vadd.f32 %v1568_v14, %v1356_v34 }
 0x27a   : > { %vm1926_vm5 = vcmp.gt.f32.partialorder %v1894_v46, 0.0  ;;  %v1958_v53 = vmul.f32 0.1, %v1894_v46 }
 0x27c   : > { %v1990_v20 = vsel %vm1926_vm5, %v1894_v46, %v1958_v53 }
 0x27d   : > { %v2054_v39 = vadd.f32 %v2022_v31, %v1990_v20  ;;  %v1815_v37 = vpop.f32.mrf.mxu3 }
 0x27e   : > { %v1859_v41 = vadd.f32 %v1815_v37, %v1569_v48  ;;  %v1574_v38 = vpop.f32.mrf.mxu2 }
 0x27f   : > { %2086 = vst.msk [vmem:[%s2922_s17 + $0xc8] sm:$0xff] %vm262_vm1, %v2054_v39 }
 0x280   : > { %v1895_v12 = vadd.f32 %v2908_v62, %v1859_v41  ;;  %v1359_v32 = vpop.f32.mrf.mxu1 }
 0x281   : > { %v1572_v16 = vadd.f32 %v1571_v0, %v1359_v32 }
 0x282   : > { %vm1927_vm9 = vcmp.gt.f32.partialorder %v1895_v12, 0.0  ;;  %v1959_v43 = vmul.f32 0.1, %v1895_v12 }
 0x284   : > { %v1991_v9 = vsel %vm1927_vm9, %v1895_v12, %v1959_v43 }
 0x285   : > { %v2055_v47 = vadd.f32 %v2023_v27, %v1991_v9  ;;  %v1818_v45 = vpop.f32.mrf.mxu3 }
 0x286   : > { %v1860_v50 = vadd.f32 %v1818_v45, %v1572_v16  ;;  %v1577_v15 = vpop.f32.mrf.mxu2 }
 0x287   : > { %2087 = vst.msk [vmem:[%s2922_s17 + $0xd0] sm:$0xff] %vm262_vm1, %v2055_v47 }
 0x288   : > { %v1896_v54 = vadd.f32 %v2908_v62, %v1860_v50  ;;  %v1362_v56 = vpop.f32.mrf.mxu1 }
 0x289   : > { %v1575_v10 = vadd.f32 %v1574_v38, %v1362_v56 }
 0x28a   : > { %vm1928_vm13 = vcmp.gt.f32.partialorder %v1896_v54, 0.0  ;;  %v1960_v57 = vmul.f32 0.1, %v1896_v54 }
 0x28c   : > { %v1992_v11 = vsel %vm1928_vm13, %v1896_v54, %v1960_v57 }
 0x28d   : > { %v2056_v25 = vadd.f32 %v2024_v60, %v1992_v11  ;;  %v1821_v40 = vpop.f32.mrf.mxu3 }
 0x28e   : > { %v1861_v13 = vadd.f32 %v1821_v40, %v1575_v10  ;;  %v1580_v6 = vpop.f32.mrf.mxu2 }
 0x28f   : > { %2088 = vst.msk [vmem:[%s2922_s17 + $0xd8] sm:$0xff] %vm262_vm1, %v2056_v25 }
 0x290   : > { %v1897_v52 = vadd.f32 %v2908_v62, %v1861_v13  ;;  %v1365_v1 = vpop.f32.mrf.mxu1 }
 0x291   : > { %v1578_v30 = vadd.f32 %v1577_v15, %v1365_v1 }
 0x292   : > { %vm1929_vm14 = vcmp.gt.f32.partialorder %v1897_v52, 0.0  ;;  %v1961_v44 = vmul.f32 0.1, %v1897_v52 }
 0x294   : > { %v1993_v49 = vsel %vm1929_vm14, %v1897_v52, %v1961_v44 }
 0x295   : > { %v2057_v58 = vadd.f32 %v2025_v55, %v1993_v49  ;;  %v1824_v5 = vpop.f32.mrf.mxu3 }
 0x296   : > { %v1862_v61 = vadd.f32 %v1824_v5, %v1578_v30  ;;  %v1583_v22 = vpop.f32.mrf.mxu2 }
 0x297   : > { %2089 = vst.msk [vmem:[%s2922_s17 + $0xe0] sm:$0xff] %vm262_vm1, %v2057_v58 }
 0x298   : > { %v1898_v33 = vadd.f32 %v2908_v62, %v1862_v61  ;;  %v1368_v35 = vpop.f32.mrf.mxu1 }
 0x299   : > { %v1581_v2 = vadd.f32 %v1580_v6, %v1368_v35 }
 0x29a   : > { %vm1930_vm4 = vcmp.gt.f32.partialorder %v1898_v33, 0.0  ;;  %v1962_v18 = vmul.f32 0.1, %v1898_v33 }
 0x29c   : > { %v1994_v26 = vsel %vm1930_vm4, %v1898_v33, %v1962_v18 }
 0x29d   : > { %v2058_v3 = vadd.f32 %v2026_v51, %v1994_v26  ;;  %v1827_v4 = vpop.f32.mrf.mxu3 }
 0x29e   : > { %v1863_v7 = vadd.f32 %v1827_v4, %v1581_v2 }
 0x29f   : > { %2090 = vst.msk [vmem:[%s2922_s17 + $0xe8] sm:$0xff] %vm262_vm1, %v2058_v3 }
 0x2a0   : > { %v1899_v8 = vadd.f32 %v2908_v62, %v1863_v7  ;;  %v1371_v17 = vpop.f32.mrf.mxu1 }
 0x2a1   : > { %v1584_v14 = vadd.f32 %v1583_v22, %v1371_v17 }
 0x2a2   : > { %vm1931_vm0 = vcmp.gt.f32.partialorder %v1899_v8, 0.0  ;;  %v1963_v63 = vmul.f32 0.1, %v1899_v8 }
 0x2a4   : > { %v1995_v28 = vsel %vm1931_vm0, %v1899_v8, %v1963_v63 }
 0x2a5   : > { %v2059_v59 = vadd.f32 %v2027_v36, %v1995_v28  ;;  %v1830_v42 = vpop.f32.mrf.mxu3 }
 0x2a6   : > { %v1864_v19 = vadd.f32 %v1830_v42, %v1584_v14 }
 0x2a7   : > { %2091 = vst.msk [vmem:[%s2922_s17 + $0xf0] sm:$0xff] %vm262_vm1, %v2059_v59 }
 0x2a8   : > { %v1900_v21 = vadd.f32 %v2908_v62, %v1864_v19 }
 0x2aa   : > { %vm1932_vm15 = vcmp.gt.f32.partialorder %v1900_v21, 0.0  ;;  %v1964_v23 = vmul.f32 0.1, %v1900_v21 }
 0x2ac   : > { %v1996_v29 = vsel %vm1932_vm15, %v1900_v21, %v1964_v23 }
 0x2ad   : > { %v2060_v46 = vadd.f32 %v2028_v24, %v1996_v29 }
 0x2af   : > { %2092 = vst.msk [vmem:[%s2922_s17 + $0xf8] sm:$0xff] %vm262_vm1, %v2060_v46 }
 0x2b0 PF: > { %s15_s18 = sadd.s32 1, %s2315_s18  }
 0x2b1   : > { %p12_p4 = scmp.ge.s32.totalorder %s15_s18, 4  }
 0x2b3   :  { %14 = sbr.rel (!%p12_p4) target bundleno = 1 (0x1), region = 75 }

</bundles_post_ra>
